<compile_context>
chip_gen: v5e
topology: v5e:2x2
jax: 0.10.0
libtpu: 0.0.40
codegen_flags: <defaults>
</compile_context>

<pallas_src>
from functools import partial

import numpy as np
import jax
import jax.numpy as jnp
from jax import lax
from jax.experimental import pallas as pl
from jax.experimental.pallas import tpu as pltpu


# ----------------------------- host-side helpers -----------------------------

def _interp_matrix(out_size: int, in_size: int) -> np.ndarray:
    """Row-stochastic matrix implementing 1-D bilinear resize, align_corners=True."""
    m = np.zeros((out_size, in_size), np.float32)
    if out_size == 1:
        m[0, 0] = 1.0
        return m
    scale = (in_size - 1) / (out_size - 1)
    src = np.arange(out_size, dtype=np.float64) * scale
    lo = np.clip(np.floor(src), 0, in_size - 1).astype(np.int64)
    hi = np.clip(lo + 1, 0, in_size - 1)
    frac = (src - lo).astype(np.float32)
    rows = np.arange(out_size)
    np.add.at(m, (rows, lo), 1.0 - frac)
    np.add.at(m, (rows, hi), frac)
    return m


def _boundary_masks(H: int, W: int) -> np.ndarray:
    """(9, H*W) 0/1 masks: tap (dy,dx) is valid at (i,j) iff the 3x3/pad=1 conv
    would read an in-bounds pixel (i+dy-1, j+dx-1)."""
    ii, jj = np.meshgrid(np.arange(H), np.arange(W), indexing="ij")
    masks = np.zeros((9, H * W), np.float32)
    for t in range(9):
        dy, dx = t // 3, t % 3
        valid = ((ii + dy - 1 >= 0) & (ii + dy - 1 < H) &
                 (jj + dx - 1 >= 0) & (jj + dx - 1 < W))
        masks[t] = valid.reshape(-1).astype(np.float32)
    return masks


def _grouped_weight_matrix(w_oihw: jnp.ndarray, cin: int, groups: int) -> jnp.ndarray:
    """PyTorch grouped-conv weight (Cout, Cin/groups, 3, 3) -> dense block-diagonal
    matmul weight of shape (Cout, 9*Cin), column index = (dy*3+dx)*Cin + ci."""
    cout = w_oihw.shape[0]
    cin_g, cout_g = cin // groups, cout // groups
    w_dense = jnp.zeros((cout, cin, 3, 3), jnp.float32)
    for g in range(groups):
        w_dense = w_dense.at[g * cout_g:(g + 1) * cout_g,
                             g * cin_g:(g + 1) * cin_g].set(
            w_oihw[g * cout_g:(g + 1) * cout_g])
    # (cout, cin, 3, 3) -> (cout, 3, 3, cin) -> (cout, 9*cin)
    return jnp.transpose(w_dense, (0, 2, 3, 1)).reshape(cout, 9 * cin)


def _pick_batch_tile(n: int, cap: int = 8) -> int:
    """Largest divisor of n that is <= cap (cap keeps whole-frame blocks +
    P scratch comfortably inside every generation's scoped VMEM at test sizes)."""
    b = min(n, cap)
    while n % b:
        b -= 1
    return b


# ------------------------------ Pallas kernel --------------------------------

def _edge_extractor_kernel(aspp_ref, layer1_ref, up_ref, w_ref, mask_ref,
                           bias_ref, edge_ref, body_ref, p_ref,
                           *, b_tile, c1, c2, cout, width, hw):
    # Block shapes (B = b_tile images per grid step):
    #   aspp_ref  : (B*c1, Ha*Wa) bf16     layer1_ref: (B*c2, H*W)  bf16
    #   up_ref    : (Ha*Wa, H*W)  bf16     w_ref     : (cout, 9*cin) bf16 (scale folded)
    #   mask_ref  : (9, B*H*W)    f32      bias_ref  : (cout, 1)     f32
    #   edge/body : (B*cout, H*W) f32      p_ref     : (9*cin, B*H*W) f32 VMEM scratch
    cin = c1 + c2
    lanes = b_tile * hw

    # (1) Bilinear upsample (align_corners=True) for all B images in ONE matmul:
    # images stacked along the M/sublane axis, bf16 operands, f32 accumulation.
    up_stacked = jnp.dot(aspp_ref[...], up_ref[...],
                         preferred_element_type=jnp.float32)        # (B*c1, HW) f32

    # (2) Lane-pack the B images into a channel-major (c, B*HW) slab.
    # Pure lane/sublane placement: lane offsets are multiples of 128 (HW=multiple
    # of 128) and sublane offsets multiples of 8 -- no transposes.
    up_lanes = jnp.concatenate(
        [up_stacked[b * c1:(b + 1) * c1, :] for b in range(b_tile)], axis=1)
    l1_all = layer1_ref[...].astype(jnp.float32)                    # (B*c2, HW)
    l1_lanes = jnp.concatenate(
        [l1_all[b * c2:(b + 1) * c2, :] for b in range(b_tile)], axis=1)
    x = jnp.concatenate([up_lanes, l1_lanes], axis=0)               # (cin, lanes) f32

    # (3) im2col: one lane roll (XLU) + boundary mask (VPU) per tap, written as a
    # sublane-aligned (24-row) block of the (9*cin, B*HW) patch matrix.  Rolls
    # that wrap across image (or whole-slab) boundaries hit exactly the
    # zero-padding positions of the conv, which the tiled masks zero out.
    for t in range(9):
        dy, dx = t // 3, t % 3
        # need x[s + (dy-1)*W + (dx-1)] at lane s  ->  roll by the negative.
        shift = ((1 - dy) * width + (1 - dx)) % lanes
        tap = x if shift == 0 else pltpu.roll(x, shift, axis=1)
        p_ref[t * cin:(t + 1) * cin, :] = tap * mask_ref[t:t + 1, :]

    # (4) Whole 3x3 grouped conv (block-diagonal dense weights with the BN scale
    # already folded in) as a single K = 9*cin matmul.  Operands explicitly bf16
    # so MXU precision does not depend on the ambient default.
    acc = jnp.dot(w_ref[...], p_ref[...].astype(jnp.bfloat16),
                  preferred_element_type=jnp.float32)                # (cout, lanes)

    # Folded-BatchNorm bias + ReLU epilogue.
    seg_edge = jnp.maximum(acc + bias_ref[...], 0.0)

    # (5) Lane-dense per-image stores (lane offsets are multiples of 128).
    for b in range(b_tile):
        e = seg_edge[:, b * hw:(b + 1) * hw]
        edge_ref[b * cout:(b + 1) * cout, :] = e.astype(edge_ref.dtype)
        body_ref[b * cout:(b + 1) * cout, :] = (
            up_stacked[b * c1:(b + 1) * c1, :] - e).astype(body_ref.dtype)


# ------------------------------- wrapper -------------------------------------

def edge_extractor_forward(aspp_nchw, layer1_nchw, w_oihw,
                           gamma, beta, run_mean, run_var,
                           groups=8, eps=1e-5, batch_tile=None):
    aspp = jnp.asarray(aspp_nchw, jnp.float32)
    layer1 = jnp.asarray(layer1_nchw, jnp.float32)
    N, c1, Ha, Wa = aspp.shape
    Nl, c2, H, W = layer1.shape
    cout = w_oihw.shape[0]
    cin = c1 + c2

    assert Nl == N
    assert cout == c1, "seg_body = aspp_up - seg_edge requires Cout == aspp channels"
    assert cin % groups == 0 and cout % groups == 0
    assert w_oihw.shape[1] == cin // groups and tuple(w_oihw.shape[2:]) == (3, 3)

    HW, HaWa = H * W, Ha * Wa
    b_tile = batch_tile if batch_tile is not None else _pick_batch_tile(N)
    assert N % b_tile == 0

    # Static host-side tables.
    ah = _interp_matrix(H, Ha)                                  # (H, Ha)
    aw = _interp_matrix(W, Wa)                                  # (W, Wa)
    up_t = jnp.asarray(np.kron(ah, aw).T, jnp.bfloat16)         # (Ha*Wa, H*W)
    masks = jnp.asarray(np.tile(_boundary_masks(H, W), (1, b_tile)),
                        jnp.float32)                            # (9, b_tile*H*W)

    # Eval-mode BatchNorm: fold the scale into the conv weights, keep only bias.
    scale = (jnp.asarray(gamma, jnp.float32) /
             jnp.sqrt(jnp.asarray(run_var, jnp.float32) + eps))          # (cout,)
    bias = (jnp.asarray(beta, jnp.float32) -
            jnp.asarray(run_mean, jnp.float32) * scale).reshape(cout, 1)  # f32
    w_mat = (_grouped_weight_matrix(jnp.asarray(w_oihw, jnp.float32), cin, groups)
             * scale[:, None]).astype(jnp.bfloat16)              # (cout, 9*cin)

    # Channel-major, spatially-flattened, bf16 views (reshapes only, no transposes).
    aspp_flat = aspp.reshape(N * c1, HaWa).astype(jnp.bfloat16)
    layer1_flat = layer1.reshape(N * c2, HW).astype(jnp.bfloat16)

    kernel = partial(_edge_extractor_kernel, b_tile=b_tile, c1=c1, c2=c2,
                     cout=cout, width=W, hw=HW)

    grid_spec = pltpu.PrefetchScalarGridSpec(
        num_scalar_prefetch=0,
        grid=(N // b_tile,),
        in_specs=[
            pl.BlockSpec((b_tile * c1, HaWa), lambda n: (n, 0)),
            pl.BlockSpec((b_tile * c2, HW), lambda n: (n, 0)),
            pl.BlockSpec((HaWa, HW), lambda n: (0, 0)),
            pl.BlockSpec((cout, 9 * cin), lambda n: (0, 0)),
            pl.BlockSpec((9, b_tile * HW), lambda n: (0, 0)),
            pl.BlockSpec((cout, 1), lambda n: (0, 0)),
        ],
        out_specs=[
            pl.BlockSpec((b_tile * cout, HW), lambda n: (n, 0)),
            pl.BlockSpec((b_tile * cout, HW), lambda n: (n, 0)),
        ],
        scratch_shapes=[pltpu.VMEM((9 * cin, b_tile * HW), jnp.float32)],  # im2col P
    )

    edge, body = pl.pallas_call(
        kernel,
        out_shape=(jax.ShapeDtypeStruct((N * cout, HW), jnp.float32),
                   jax.ShapeDtypeStruct((N * cout, HW), jnp.float32)),
        grid_spec=grid_spec,
        compiler_params=pltpu.CompilerParams(dimension_semantics=("parallel",)),
    )(aspp_flat, layer1_flat, up_t, w_mat, masks, bias)

    # Back to PyTorch NCHW: pure reshape, no transpose.
    return edge.reshape(N, cout, H, W), body.reshape(N, cout, H, W)


# --------------------------- pure-JAX reference -------------------------------

def _reference(aspp, layer1, w_oihw, gamma, beta, run_mean, run_var,
               groups=8, eps=1e-5):
    N, c1, Ha, Wa = aspp.shape
    H, W = layer1.shape[2:]
    ah = jnp.asarray(_interp_matrix(H, Ha))
    aw = jnp.asarray(_interp_matrix(W, Wa))
    aspp_up = jnp.einsum('ih,jw,nchw->ncij', ah, aw, aspp,
                         precision=lax.Precision.HIGHEST)
    x = jnp.concatenate([aspp_up, layer1], axis=1)
    y = lax.conv_general_dilated(x, w_oihw, (1, 1), ((1, 1), (1, 1)),
                                 dimension_numbers=('NCHW', 'OIHW', 'NCHW'),
                                 feature_group_count=groups,
                                 precision=lax.Precision.HIGHEST)
    scale = gamma / jnp.sqrt(run_var + eps)
    bias = beta - run_mean * scale
    y = y * scale[None, :, None, None] + bias[None, :, None, None]
    seg_edge = jnp.maximum(y, 0.0)
    return seg_edge, aspp_up - seg_edge


# ---------------------------------- main --------------------------------------

if __name__ == "__main__":
    key = jax.random.PRNGKey(0)
    N, inplane, skip_num, groups = 2, 16, 8, 8
    Ha = Wa = 8          # aspp spatial size (upsampled to layer1's size)
    H = W = 16           # layer1 spatial size
    cin = inplane + skip_num

    k1, k2, k3, k4, k5, k6, k7 = jax.random.split(key, 7)
    aspp = jax.random.normal(k1, (N, inplane, Ha, Wa), jnp.float32)
    layer1 = jax.random.normal(k2, (N, skip_num, H, W), jnp.float32)

    # Deterministic synthetic parameters (Conv2d weight in PyTorch OIHW layout).
    w_oihw = 0.1 * jax.random.normal(k3, (inplane, cin // groups, 3, 3), jnp.float32)
    gamma = 1.0 + 0.1 * jax.random.normal(k4, (inplane,), jnp.float32)
    beta = 0.1 * jax.random.normal(k5, (inplane,), jnp.float32)
    run_mean = 0.1 * jax.random.normal(k6, (inplane,), jnp.float32)
    run_var = jnp.abs(jax.random.normal(k7, (inplane,), jnp.float32)) + 0.5

    seg_edge, seg_body = edge_extractor_forward(
        aspp, layer1, w_oihw, gamma, beta, run_mean, run_var, groups=groups)
    jax.block_until_ready((seg_edge, seg_body))

    ref_edge, ref_body = _reference(
        aspp, layer1, w_oihw, gamma, beta, run_mean, run_var, groups=groups)

    assert seg_edge.shape == (N, inplane, H, W)
    assert seg_body.shape == (N, inplane, H, W)
    # Kernel matmuls use explicit bf16 operands with f32 accumulation; the
    # reference is exact f32 (HIGHEST), so the tolerance reflects bf16 operand
    # rounding over a K=216 contraction (same bound the previous version used).
    assert jnp.allclose(seg_edge, ref_edge, atol=5e-2, rtol=5e-2)
    assert jnp.allclose(seg_body, ref_body, atol=5e-2, rtol=5e-2)
    print("KERNEL_OK")
</pallas_src>

<mosaic_0001>
module attributes {stable_mosaic.version = 11 : i64} {
  func.func @_edge_extractor_kernel(%arg0: i32, %arg1: memref<32x64xbf16, #tpu.memory_space<vmem>>, %arg2: memref<16x256xbf16, #tpu.memory_space<vmem>>, %arg3: memref<64x256xbf16, #tpu.memory_space<vmem>>, %arg4: memref<16x216xbf16, #tpu.memory_space<vmem>>, %arg5: memref<9x512xf32, #tpu.memory_space<vmem>>, %arg6: memref<16x1xf32, #tpu.memory_space<vmem>>, %arg7: memref<32x256xf32, #tpu.memory_space<vmem>>, %arg8: memref<32x256xf32, #tpu.memory_space<vmem>>, %arg9: memref<216x512xf32, #tpu.memory_space<vmem>>) attributes {dimension_semantics = [#tpu.dimension_semantics<parallel>], iteration_bounds = array<i64: 1>, scalar_prefetch = 0 : i64, scratch_operands = 1 : i64, tpu.core_type = #tpu.core_type<tc>, window_params = [{transform_indices = @transform_0, window_bounds = array<i64: 32, 64>}, {transform_indices = @transform_1, window_bounds = array<i64: 16, 256>}, {pipeline_mode = #tpu.pipeline_mode<synchronous>, transform_indices = @transform_2, window_bounds = array<i64: 64, 256>}, {pipeline_mode = #tpu.pipeline_mode<synchronous>, transform_indices = @transform_3, window_bounds = array<i64: 16, 216>}, {pipeline_mode = #tpu.pipeline_mode<synchronous>, transform_indices = @transform_4, window_bounds = array<i64: 9, 512>}, {pipeline_mode = #tpu.pipeline_mode<synchronous>, transform_indices = @transform_5, window_bounds = array<i64: 16, 1>}, {transform_indices = @transform_6, window_bounds = array<i64: 32, 256>}, {transform_indices = @transform_7, window_bounds = array<i64: 32, 256>}]} {
    %c0 = arith.constant 0 : index
    %c0_0 = arith.constant 0 : index
    %0 = vector.load %arg1[%c0, %c0_0] : memref<32x64xbf16, #tpu.memory_space<vmem>>, vector<32x64xbf16>
    %c0_1 = arith.constant 0 : index
    %c0_2 = arith.constant 0 : index
    %1 = vector.load %arg3[%c0_1, %c0_2] : memref<64x256xbf16, #tpu.memory_space<vmem>>, vector<64x256xbf16>
    %cst = arith.constant dense<0.000000e+00> : vector<32x256xf32>
    %2 = tpu.matmul %0, %1, %cst {dimension_numbers = #tpu.dot_dimension_numbers<[1], [0], [0], [1], [0, 0, 1, 1], [], []>} : vector<32x64xbf16>, vector<64x256xbf16>, vector<32x256xf32> -> vector<32x256xf32>
    %3 = vector.extract_strided_slice %2 {offsets = [0, 0], sizes = [16, 256], strides = [1, 1]} : vector<32x256xf32> to vector<16x256xf32>
    %4 = vector.extract_strided_slice %2 {offsets = [16, 0], sizes = [16, 256], strides = [1, 1]} : vector<32x256xf32> to vector<16x256xf32>
    %5 = tpu.concatenate %3, %4 in 1 : vector<16x256xf32>, vector<16x256xf32> -> vector<16x512xf32>
    %c0_3 = arith.constant 0 : index
    %c0_4 = arith.constant 0 : index
    %6 = vector.load %arg2[%c0_3, %c0_4] : memref<16x256xbf16, #tpu.memory_space<vmem>>, vector<16x256xbf16>
    %7 = arith.extf %6 : vector<16x256xbf16> to vector<16x256xf32>
    %8 = vector.extract_strided_slice %7 {offsets = [0, 0], sizes = [8, 256], strides = [1, 1]} : vector<16x256xf32> to vector<8x256xf32>
    %9 = vector.extract_strided_slice %7 {offsets = [8, 0], sizes = [8, 256], strides = [1, 1]} : vector<16x256xf32> to vector<8x256xf32>
    %10 = tpu.concatenate %8, %9 in 1 : vector<8x256xf32>, vector<8x256xf32> -> vector<8x512xf32>
    %11 = tpu.concatenate %5, %10 in 0 : vector<16x512xf32>, vector<8x512xf32> -> vector<24x512xf32>
    %c17_i32 = arith.constant 17 : i32
    %12 = tpu.dynamic_rotate %11 by %c17_i32 dim 1 : vector<24x512xf32>, i32 -> vector<24x512xf32>
    %c0_5 = arith.constant 0 : index
    %c0_6 = arith.constant 0 : index
    %13 = vector.load %arg5[%c0_5, %c0_6] : memref<9x512xf32, #tpu.memory_space<vmem>>, vector<1x512xf32>
    %14 = vector.broadcast %13 : vector<1x512xf32> to vector<24x512xf32>
    %15 = arith.mulf %12, %14 : vector<24x512xf32>
    %c0_7 = arith.constant 0 : index
    %c0_8 = arith.constant 0 : index
    %16 = vector.load %arg9[%c0_7, %c0_8] : memref<216x512xf32, #tpu.memory_space<vmem>>, vector<24x512xf32>
    tpu.vector_store %arg9[%c0_7, %c0_8], %15 {strides = array<i32>} : memref<216x512xf32, #tpu.memory_space<vmem>>, vector<24x512xf32>,
    %c16_i32 = arith.constant 16 : i32
    %17 = tpu.dynamic_rotate %11 by %c16_i32 dim 1 : vector<24x512xf32>, i32 -> vector<24x512xf32>
    %c1 = arith.constant 1 : index
    %c0_9 = arith.constant 0 : index
    %18 = vector.load %arg5[%c1, %c0_9] : memref<9x512xf32, #tpu.memory_space<vmem>>, vector<1x512xf32>
    %19 = vector.broadcast %18 : vector<1x512xf32> to vector<24x512xf32>
    %20 = arith.mulf %17, %19 : vector<24x512xf32>
    %c24 = arith.constant 24 : index
    %c0_10 = arith.constant 0 : index
    %21 = vector.load %arg9[%c24, %c0_10] : memref<216x512xf32, #tpu.memory_space<vmem>>, vector<24x512xf32>
    tpu.vector_store %arg9[%c24, %c0_10], %20 {strides = array<i32>} : memref<216x512xf32, #tpu.memory_space<vmem>>, vector<24x512xf32>,
    %c15_i32 = arith.constant 15 : i32
    %22 = tpu.dynamic_rotate %11 by %c15_i32 dim 1 : vector<24x512xf32>, i32 -> vector<24x512xf32>
    %c2 = arith.constant 2 : index
    %c0_11 = arith.constant 0 : index
    %23 = vector.load %arg5[%c2, %c0_11] : memref<9x512xf32, #tpu.memory_space<vmem>>, vector<1x512xf32>
    %24 = vector.broadcast %23 : vector<1x512xf32> to vector<24x512xf32>
    %25 = arith.mulf %22, %24 : vector<24x512xf32>
    %c48 = arith.constant 48 : index
    %c0_12 = arith.constant 0 : index
    %26 = vector.load %arg9[%c48, %c0_12] : memref<216x512xf32, #tpu.memory_space<vmem>>, vector<24x512xf32>
    tpu.vector_store %arg9[%c48, %c0_12], %25 {strides = array<i32>} : memref<216x512xf32, #tpu.memory_space<vmem>>, vector<24x512xf32>,
    %c1_i32 = arith.constant 1 : i32
    %27 = tpu.dynamic_rotate %11 by %c1_i32 dim 1 : vector<24x512xf32>, i32 -> vector<24x512xf32>
    %c3 = arith.constant 3 : index
    %c0_13 = arith.constant 0 : index
    %28 = vector.load %arg5[%c3, %c0_13] : memref<9x512xf32, #tpu.memory_space<vmem>>, vector<1x512xf32>
    %29 = vector.broadcast %28 : vector<1x512xf32> to vector<24x512xf32>
    %30 = arith.mulf %27, %29 : vector<24x512xf32>
    %c72 = arith.constant 72 : index
    %c0_14 = arith.constant 0 : index
    %31 = vector.load %arg9[%c72, %c0_14] : memref<216x512xf32, #tpu.memory_space<vmem>>, vector<24x512xf32>
    tpu.vector_store %arg9[%c72, %c0_14], %30 {strides = array<i32>} : memref<216x512xf32, #tpu.memory_space<vmem>>, vector<24x512xf32>,
    %c4 = arith.constant 4 : index
    %c0_15 = arith.constant 0 : index
    %32 = vector.load %arg5[%c4, %c0_15] : memref<9x512xf32, #tpu.memory_space<vmem>>, vector<1x512xf32>
    %33 = vector.broadcast %32 : vector<1x512xf32> to vector<24x512xf32>
    %34 = arith.mulf %11, %33 : vector<24x512xf32>
    %c96 = arith.constant 96 : index
    %c0_16 = arith.constant 0 : index
    %35 = vector.load %arg9[%c96, %c0_16] : memref<216x512xf32, #tpu.memory_space<vmem>>, vector<24x512xf32>
    tpu.vector_store %arg9[%c96, %c0_16], %34 {strides = array<i32>} : memref<216x512xf32, #tpu.memory_space<vmem>>, vector<24x512xf32>,
    %c511_i32 = arith.constant 511 : i32
    %36 = tpu.dynamic_rotate %11 by %c511_i32 dim 1 : vector<24x512xf32>, i32 -> vector<24x512xf32>
    %c5 = arith.constant 5 : index
    %c0_17 = arith.constant 0 : index
    %37 = vector.load %arg5[%c5, %c0_17] : memref<9x512xf32, #tpu.memory_space<vmem>>, vector<1x512xf32>
    %38 = vector.broadcast %37 : vector<1x512xf32> to vector<24x512xf32>
    %39 = arith.mulf %36, %38 : vector<24x512xf32>
    %c120 = arith.constant 120 : index
    %c0_18 = arith.constant 0 : index
    %40 = vector.load %arg9[%c120, %c0_18] : memref<216x512xf32, #tpu.memory_space<vmem>>, vector<24x512xf32>
    tpu.vector_store %arg9[%c120, %c0_18], %39 {strides = array<i32>} : memref<216x512xf32, #tpu.memory_space<vmem>>, vector<24x512xf32>,
    %c497_i32 = arith.constant 497 : i32
    %41 = tpu.dynamic_rotate %11 by %c497_i32 dim 1 : vector<24x512xf32>, i32 -> vector<24x512xf32>
    %c6 = arith.constant 6 : index
    %c0_19 = arith.constant 0 : index
    %42 = vector.load %arg5[%c6, %c0_19] : memref<9x512xf32, #tpu.memory_space<vmem>>, vector<1x512xf32>
    %43 = vector.broadcast %42 : vector<1x512xf32> to vector<24x512xf32>
    %44 = arith.mulf %41, %43 : vector<24x512xf32>
    %c144 = arith.constant 144 : index
    %c0_20 = arith.constant 0 : index
    %45 = vector.load %arg9[%c144, %c0_20] : memref<216x512xf32, #tpu.memory_space<vmem>>, vector<24x512xf32>
    tpu.vector_store %arg9[%c144, %c0_20], %44 {strides = array<i32>} : memref<216x512xf32, #tpu.memory_space<vmem>>, vector<24x512xf32>,
    %c496_i32 = arith.constant 496 : i32
    %46 = tpu.dynamic_rotate %11 by %c496_i32 dim 1 : vector<24x512xf32>, i32 -> vector<24x512xf32>
    %c7 = arith.constant 7 : index
    %c0_21 = arith.constant 0 : index
    %47 = vector.load %arg5[%c7, %c0_21] : memref<9x512xf32, #tpu.memory_space<vmem>>, vector<1x512xf32>
    %48 = vector.broadcast %47 : vector<1x512xf32> to vector<24x512xf32>
    %49 = arith.mulf %46, %48 : vector<24x512xf32>
    %c168 = arith.constant 168 : index
    %c0_22 = arith.constant 0 : index
    %50 = vector.load %arg9[%c168, %c0_22] : memref<216x512xf32, #tpu.memory_space<vmem>>, vector<24x512xf32>
    tpu.vector_store %arg9[%c168, %c0_22], %49 {strides = array<i32>} : memref<216x512xf32, #tpu.memory_space<vmem>>, vector<24x512xf32>,
    %c495_i32 = arith.constant 495 : i32
    %51 = tpu.dynamic_rotate %11 by %c495_i32 dim 1 : vector<24x512xf32>, i32 -> vector<24x512xf32>
    %c8 = arith.constant 8 : index
    %c0_23 = arith.constant 0 : index
    %52 = vector.load %arg5[%c8, %c0_23] : memref<9x512xf32, #tpu.memory_space<vmem>>, vector<1x512xf32>
    %53 = vector.broadcast %52 : vector<1x512xf32> to vector<24x512xf32>
    %54 = arith.mulf %51, %53 : vector<24x512xf32>
    %c192 = arith.constant 192 : index
    %c0_24 = arith.constant 0 : index
    %55 = vector.load %arg9[%c192, %c0_24] : memref<216x512xf32, #tpu.memory_space<vmem>>, vector<24x512xf32>
    tpu.vector_store %arg9[%c192, %c0_24], %54 {strides = array<i32>} : memref<216x512xf32, #tpu.memory_space<vmem>>, vector<24x512xf32>,
    %c0_25 = arith.constant 0 : index
    %c0_26 = arith.constant 0 : index
    %56 = vector.load %arg4[%c0_25, %c0_26] : memref<16x216xbf16, #tpu.memory_space<vmem>>, vector<16x216xbf16>
    %c0_27 = arith.constant 0 : index
    %c0_28 = arith.constant 0 : index
    %57 = vector.load %arg9[%c0_27, %c0_28] : memref<216x512xf32, #tpu.memory_space<vmem>>, vector<216x512xf32>
    %58 = arith.truncf %57 : vector<216x512xf32> to vector<216x512xbf16>
    %cst_29 = arith.constant dense<0.000000e+00> : vector<16x512xf32>
    %59 = tpu.matmul %56, %58, %cst_29 {dimension_numbers = #tpu.dot_dimension_numbers<[1], [0], [0], [1], [0, 0, 1, 1], [], []>} : vector<16x216xbf16>, vector<216x512xbf16>, vector<16x512xf32> -> vector<16x512xf32>
    %c0_30 = arith.constant 0 : index
    %c0_31 = arith.constant 0 : index
    %60 = vector.load %arg6[%c0_30, %c0_31] : memref<16x1xf32, #tpu.memory_space<vmem>>, vector<16x1xf32>
    %61 = vector.broadcast %60 : vector<16x1xf32> to vector<16x512xf32>
    %62 = arith.addf %59, %61 : vector<16x512xf32>
    %cst_32 = arith.constant 0.000000e+00 : f32
    %63 = vector.broadcast %cst_32 : f32 to vector<16x512xf32>
    %64 = arith.maximumf %62, %63 : vector<16x512xf32>
    %65 = vector.extract_strided_slice %64 {offsets = [0, 0], sizes = [16, 256], strides = [1, 1]} : vector<16x512xf32> to vector<16x256xf32>
    %c0_33 = arith.constant 0 : index
    %c0_34 = arith.constant 0 : index
    %66 = vector.load %arg7[%c0_33, %c0_34] : memref<32x256xf32, #tpu.memory_space<vmem>>, vector<16x256xf32>
    tpu.vector_store %arg7[%c0_33, %c0_34], %65 {strides = array<i32>} : memref<32x256xf32, #tpu.memory_space<vmem>>, vector<16x256xf32>,
    %67 = vector.extract_strided_slice %2 {offsets = [0, 0], sizes = [16, 256], strides = [1, 1]} : vector<32x256xf32> to vector<16x256xf32>
    %68 = arith.subf %67, %65 : vector<16x256xf32>
    %c0_35 = arith.constant 0 : index
    %c0_36 = arith.constant 0 : index
    %69 = vector.load %arg8[%c0_35, %c0_36] : memref<32x256xf32, #tpu.memory_space<vmem>>, vector<16x256xf32>
    tpu.vector_store %arg8[%c0_35, %c0_36], %68 {strides = array<i32>} : memref<32x256xf32, #tpu.memory_space<vmem>>, vector<16x256xf32>,
    %70 = vector.extract_strided_slice %64 {offsets = [0, 256], sizes = [16, 256], strides = [1, 1]} : vector<16x512xf32> to vector<16x256xf32>
    %c16 = arith.constant 16 : index
    %c0_37 = arith.constant 0 : index
    %71 = vector.load %arg7[%c16, %c0_37] : memref<32x256xf32, #tpu.memory_space<vmem>>, vector<16x256xf32>
    tpu.vector_store %arg7[%c16, %c0_37], %70 {strides = array<i32>} : memref<32x256xf32, #tpu.memory_space<vmem>>, vector<16x256xf32>,
    %72 = vector.extract_strided_slice %2 {offsets = [16, 0], sizes = [16, 256], strides = [1, 1]} : vector<32x256xf32> to vector<16x256xf32>
    %73 = arith.subf %72, %70 : vector<16x256xf32>
    %c16_38 = arith.constant 16 : index
    %c0_39 = arith.constant 0 : index
    %74 = vector.load %arg8[%c16_38, %c0_39] : memref<32x256xf32, #tpu.memory_space<vmem>>, vector<16x256xf32>
    tpu.vector_store %arg8[%c16_38, %c0_39], %73 {strides = array<i32>} : memref<32x256xf32, #tpu.memory_space<vmem>>, vector<16x256xf32>,
    return
  }
  func.func @transform_0(%arg0: i32) -> (i32, i32) {
    %c0_i32 = arith.constant 0 : i32
    %c0_i32_0 = arith.constant 0 : i32
    return %arg0, %c0_i32 : i32, i32
  }
  func.func @transform_1(%arg0: i32) -> (i32, i32) {
    %c0_i32 = arith.constant 0 : i32
    %c0_i32_0 = arith.constant 0 : i32
    return %arg0, %c0_i32 : i32, i32
  }
  func.func @transform_2(%arg0: i32) -> (i32, i32) {
    %c0_i32 = arith.constant 0 : i32
    %c0_i32_0 = arith.constant 0 : i32
    %c0_i32_1 = arith.constant 0 : i32
    return %c0_i32, %c0_i32_0 : i32, i32
  }
  func.func @transform_3(%arg0: i32) -> (i32, i32) {
    %c0_i32 = arith.constant 0 : i32
    %c0_i32_0 = arith.constant 0 : i32
    %c0_i32_1 = arith.constant 0 : i32
    return %c0_i32, %c0_i32_0 : i32, i32
  }
  func.func @transform_4(%arg0: i32) -> (i32, i32) {
    %c0_i32 = arith.constant 0 : i32
    %c0_i32_0 = arith.constant 0 : i32
    %c0_i32_1 = arith.constant 0 : i32
    return %c0_i32, %c0_i32_0 : i32, i32
  }
  func.func @transform_5(%arg0: i32) -> (i32, i32) {
    %c0_i32 = arith.constant 0 : i32
    %c0_i32_0 = arith.constant 0 : i32
    %c0_i32_1 = arith.constant 0 : i32
    return %c0_i32, %c0_i32_0 : i32, i32
  }
  func.func @transform_6(%arg0: i32) -> (i32, i32) {
    %c0_i32 = arith.constant 0 : i32
    %c0_i32_0 = arith.constant 0 : i32
    return %arg0, %c0_i32 : i32, i32
  }
  func.func @transform_7(%arg0: i32) -> (i32, i32) {
    %c0_i32 = arith.constant 0 : i32
    %c0_i32_0 = arith.constant 0 : i32
    return %arg0, %c0_i32 : i32, i32
  }
}

</mosaic_0001>

<bundles_post_ra>
// kernel: tpu_custom_call.1
= control target key start
LH: loop header
LB: loop body
LE: loop exit
PB: predicated region body
PF: predicated region fallthrough
CT: control target
= control target key end

     0   :  { %13 = vsyncpa [#allocation4], 0  ;;  %s2676_s0 = inlined_call_operand.vmem [shape: bf16[32,64], index: 0, kind: input, shape index: {}]   ;;  %s2677_s1 = inlined_call_operand.hbm [shape: bf16[16,256], index: 1, kind: input, shape index: {}]   ;;  %s2678_s2 = inlined_call_operand.hbm [shape: bf16[64,256], index: 2, kind: input, shape index: {}]   ;;  %s2679_s3 = inlined_call_operand.hbm [shape: bf16[16,216], index: 3, kind: input, shape index: {}]   ;;  %s2680_s4 = inlined_call_operand.hbm [shape: f32[9,512], index: 4, kind: input, shape index: {}]   ;;  %s2681_s5 = inlined_call_operand.vmem [shape: f32[16,1], index: 5, kind: input, shape index: {}]   ;;  %s2682_s6 = inlined_call_operand.hbm [shape: f32[32,256], index: 6, kind: output, shape index: {0}]   ;;  %s2683_s7 = inlined_call_operand.hbm [shape: f32[32,256], index: 7, kind: output, shape index: {1}]  }
   0x1   :  { %14 = vsyncpa [#allocation7], 0 }
   0x2   :  { %15 = vsyncpa [#allocation10], 0 }
   0x3   :  { %16 = vsyncpa [#allocation5], 0 }
   0x4   :  { %17 = vsyncpa [#allocation13], 0  ;;  %s37_s26 = sshll.u32 %s2678_s2, 4  ;;  %s1518_s27 = smov [#allocation6]   ;;  %s38_s26 = int_to_ptr.hbm [resolvable:$true] %s37_s26 }
   0x5   :  { %s39_s28 = sshll.u32 %s1518_s27, 4  ;;  %s24_s8 = sshll.u32 %s2677_s1, 4  ;;  %s40_s28 = int_to_ptr.vmem [resolvable:$true] %s39_s28  ;;  %s25_s8 = int_to_ptr.hbm [resolvable:$true] %s24_s8 }
   0x6   :  { %s1519_s9 = smov 128   ;;  %s1520_s10 = smov 8  }
   0x7   :  { %45 = dma.hbm_to_vmem [thread:$0]  %s38_s26, 1024, %s40_s28, [#allocation7], %s1519_s9, %s1519_s9, %s1520_s10  }
   0x8   :  { %s1521_s11 = smov [#allocation3]   ;;  %s50_s15 = sshll.u32 %s2679_s3, 4  ;;  %s51_s15 = int_to_ptr.hbm [resolvable:$true] %s50_s15 }
   0x9   :  { %s26_s12 = sshll.u32 %s1521_s11, 4  ;;  %s63_s17 = sshll.u32 %s2680_s4, 4  ;;  %s27_s12 = int_to_ptr.vmem [resolvable:$true] %s26_s12  ;;  %s64_s17 = int_to_ptr.hbm [resolvable:$true] %s63_s17 }
   0xa   :  { %32 = dma.hbm_to_vmem [thread:$0]  %s25_s8, 256, %s27_s12, [#allocation4], %s1519_s9, %s1519_s9, %s1520_s10  }
   0xb   :  { %s1522_s18 = smov [#allocation8]   ;;  %s1523_s1 = smov [#allocation9]  }
   0xc   :  { %s52_s19 = sshll.u32 %s1522_s18, 4  ;;  %s65_s20 = sshll.u32 %s1523_s1, 4  ;;  %s53_s19 = int_to_ptr.vmem [resolvable:$true] %s52_s19  ;;  %s66_s20 = int_to_ptr.vmem [resolvable:$true] %s65_s20 }
   0xd   :  { %58 = dma.hbm_to_vmem [thread:$0]  %s51_s15, 256, %s53_s19, [#allocation7], %s1519_s9, %s1519_s9, %s1520_s10  }
   0xe   :  { %s1524_s21 = smov 512   ;;  %s1525_s22 = smov 32  }
   0xf   :  { %71 = dma.hbm_to_vmem [thread:$0]  %s64_s17, 1024, %s66_s20, [#allocation10], %s1524_s21, %s1524_s21, %s1525_s22  }
  0x10   :  { %1508 = dma.done.wait [#allocation4], 256  }
  0x11   :  { %1509 = vsyncadd [#allocation4], 4294967040 }
  0x12   :  { %1510 = dma.done.wait [#allocation7], 1280  }
  0x13   :  { %1511 = vsyncadd [#allocation7], 4294966016 }
  0x14   :  { %1512 = dma.done.wait [#allocation10], 1024  }
  0x15   :  { %1513 = vsyncadd [#allocation10], 4294966272  ;;  %v1267_v0 = vld [vmem:[#allocation6 + $0x34] sm:$0xf]  ;;  %v1239_v1 = vld [vmem:[#allocation6 + $0x38] sm:$0xf0]  ;;  %v228_v43 = vlaneseq }
  0x16   :  { %v1237_v2 = vld [vmem:[#allocation6 + $0x30] sm:$0xf]  ;;  %v1242_v3 = vor.u32 %v1267_v0, %v1239_v1  ;;  %v1268_v4 = vld [vmem:[#allocation6 + $0x34] sm:$0xf0]  ;;  %v1265_v5 = vld [vmem:[#allocation6 + $0x24] sm:$0xf] }
  0x17   :  { %v1231_v6 = vld [vmem:[#allocation6 + $0x28] sm:$0xf0]  ;;  %v1238_v7 = vor.u32 %v1268_v4, %v1237_v2  ;;  %v1229_v8 = vld [vmem:[#allocation6 + $0x20] sm:$0xf]  ;;  %v1266_v9 = vld [vmem:[#allocation6 + $0x24] sm:$0xf0] }
  0x18   :  { %183 = vmatpush.bf16.msra.mxu1 %v1242_v3  ;;  %v1234_v10 = vor.u32 %v1265_v5, %v1231_v6  ;;  %v1230_v11 = vor.u32 %v1266_v9, %v1229_v8  ;;  %v1263_v12 = vld [vmem:[#allocation6 + $0x14] sm:$0xf]  ;;  %v1223_v13 = vld [vmem:[#allocation6 + $0x18] sm:$0xf0]  ;;  %v1221_v14 = vld [vmem:[#allocation6 + $0x10] sm:$0xf] }
  0x19   :  { %164 = vmatpush.bf16.msra.mxu2 %v1238_v7  ;;  %v1264_v15 = vld [vmem:[#allocation6 + $0x14] sm:$0xf0]  ;;  %v198_v19 = vld [vmem:[#allocation3] sm:$0xff]  ;;  %v1226_v20 = vor.u32 %v1263_v12, %v1223_v13  ;;  %v1261_v24 = vld [vmem:[#allocation6 + $0x4] sm:$0xf]  ;;  %s1526_s3 = smov 16  }
  0x1a   :  { %v199_v16 = vld [vmem:[#allocation3 + $0x8] sm:$0xff]  ;;  %v1594_v21 = vunpack.c.l.bf16 %v198_v19  ;;  %v1596_v22 = vunpack.c.h.bf16 %v198_v19  ;;  %v1222_v23 = vor.u32 %v1264_v15, %v1221_v14  ;;  %v1215_v25 = vld [vmem:[#allocation6 + $0x8] sm:$0xf0]  ;;  %v1213_v27 = vld [vmem:[#allocation6] sm:$0xf]  ;;  %s1527_s4 = smov 17  }
  0x1b   :  { %v1590_v17 = vunpack.c.l.bf16 %v199_v16  ;;  %v1592_v18 = vunpack.c.h.bf16 %v199_v16  ;;  %v1262_v28 = vld [vmem:[#allocation6 + $0x4] sm:$0xf0]  ;;  %v1218_v30 = vor.u32 %v1261_v24, %v1215_v25  ;;  %v1259_v32 = vld [vmem:[%s2676_s0] sm:$0xff]  ;;  %vm153_vm0 = vcmask 523264   ;;  %s1528_s25 = smov 1   ;;  %s1529_s26 = smov 111  }
  0x1c   :  { %184 = vmatpush.bf16.msra.mxu1 %v1234_v10  ;;  %v1291_v29 = vpack.i.bf16 %v1596_v22, %v1594_v21  ;;  %v1214_v31 = vor.u32 %v1262_v28, %v1213_v27  ;;  %s1530_s27 = smov 15   ;;  %s1531_s28 = smov 113   ;;  %v1260_v34 = vld [vmem:[%s2676_s0 + $0x8] sm:$0xff]  ;;  %v1690_v45 = vand.u32 127, %v228_v43  ;;  %vm1007_vm4 = vcmask 1043456  }
  0x1d   :  { %2759 = vst [vmem:[#allocation19_spill] sm:$0xff] %v1590_v17  ;;  %165 = vmatpush.bf16.msra.mxu2 %v1230_v11  ;;  %v1306_v26 = vpack.i.bf16 %v1592_v18, %v1590_v17  ;;  %v1316_v33 = vpack.i.bf16 %v1592_v18, %v1594_v21  ;;  %v1326_v35 = vpack.i.bf16 %v1590_v17, %v1596_v22  ;;  %s1532_s8 = smov 112   ;;  %s1533_s9 = smov 127   ;;  %v1700_v53 = vld [vmem:[#allocation9 + $0x1] ss:$8 sm:$0xf] }
  0x1e   :  { %2760 = vst [vmem:[#allocation20_spill] sm:$0xff] %v1592_v18  ;;  %1292 = vrot.lane.b32.xlu1 %v1291_v29, %s1527_s4  ;;  %1302 = vrot.lane.b32.xlu0 %v1291_v29, %s1526_s3  ;;  %vm301_vm1 = vcmp.lt.s32.totalorder %v1690_v45, 16  ;;  %v1704_v54 = vperm.slane %v1700_v53, 2  ;;  %v1722_v61 = vld [vmem:[#allocation9] ss:$8 sm:$0xf] }
  0x1f   :  { %1307 = vrot.lane.b32.xlu2 %v1306_v26, %s1526_s3  ;;  %vm230_vm2 = vcmp.lt.s32.totalorder %v1690_v45, 17  ;;  %vm768_vm3 = vcmp.lt.s32.totalorder %v1690_v45, 111  ;;  %v1732_v5 = vperm.slane %v1722_v61, 2  ;;  %v782_v8 = vld [vmem:[#allocation9 + $0x20] ss:$8 sm:$0xf] }
  0x20   :  { %185 = vmatpush.bf16.msra.mxu1 %v1226_v20  ;;  %2765 = vst [vmem:[#allocation25_spill] sm:$0xff] %v1704_v54  ;;  %v1750_v12 = vperm.slane %v782_v8, 0  ;;  %v1752_v13 = vperm.slane %v782_v8, 1  ;;  %v1758_v16 = vperm.slane %v782_v8, 3  ;;  %v1761_v19 = vperm.slane %v1700_v53, 3  ;;  %s1170_s2 = sshll.u32 %s2682_s6, 4  ;;  %s1171_s2 = int_to_ptr.hbm [resolvable:$true] %s1170_s2 }
  0x21   :  { %166 = vmatpush.bf16.msra.mxu2 %v1222_v23  ;;  %2767 = vst [vmem:[#allocation27_spill] sm:$0xff] %v1732_v5  ;;  %vm445_vm5 = vcmp.lt.s32.totalorder %v1690_v45, 1  ;;  %vm696_vm6 = vcmp.lt.s32.totalorder %v1690_v45, 112  ;;  %vm373_vm7 = vcmp.lt.s32.totalorder %v1690_v45, 15  ;;  %vm552_vm8 = vcmp.lt.s32.totalorder %v1690_v45, 127  ;;  %s1536_s16 = smov [#allocation12]  }
  0x22   :  { %2770 = vst [vmem:[#allocation30_spill] sm:$0xff] %v1752_v13  ;;  %vm624_vm9 = vcmp.lt.s32.totalorder %v1690_v45, 113  ;;  %vm1003_vm10 = vcmask 719872   ;;  %s1181_s17 = sshll.u32 %s1536_s16, 4  ;;  %s1183_s1 = sshll.u32 %s2683_s7, 4  ;;  %s1182_s17 = int_to_ptr.vmem [resolvable:$true] %s1181_s17  ;;  %s1184_s1 = int_to_ptr.hbm [resolvable:$true] %s1183_s1 }
  0x23   :  { %2771 = vst [vmem:[#allocation31_spill] sm:$0xff] %v1761_v19  ;;  %s1537_s6 = smov 256  }
  0x24   :  { %186 = vmatpush.bf16.msra.mxu1 %v1218_v30 }
  0x25   :  { %167 = vmatpush.bf16.msra.mxu2 %v1214_v31 }
  0x26   :  { %1297 = vrot.lane.b32.xlu1 %v1306_v26, %s1527_s4  ;;  %1312 = vrot.lane.b32.xlu0 %v1291_v29, %s1529_s26 }
  0x27   :  { %1245 = vmatmul.msk.bf16.vlgmr.msra.gmra.mxu1 %vm153_vm0, %v1259_v32  ;;  %1317 = vrot.lane.b32.xlu2 %v1316_v33, %s1528_s25 }
  0x28   :  { %1243 = vmatmul.msk.bf16.vlgmr.msra.gmra.mxu2 %vm153_vm0, %v1259_v32 }
  0x2e   :  { %1332 = vrot.lane.b32.xlu1 %v1306_v26, %s1529_s26  ;;  %1347 = vrot.lane.b32.xlu0 %v1291_v29, %s1531_s28 }
  0x2f   :  { %1322 = vrot.lane.b32.xlu2 %v1316_v33, %s1530_s27 }
  0x36   :  { %1337 = vrot.lane.b32.xlu1 %v1291_v29, %s1532_s8  ;;  %1357 = vrot.lane.b32.xlu0 %v1291_v29, %s1533_s9 }
  0x37   :  { %1246 = vmatmul.msk.bf16.gmra.mxu1 %vm153_vm0, %v1260_v34  ;;  %1327 = vrot.lane.b32.xlu2 %v1326_v35, %s1528_s25 }
  0x38   :  { %1244 = vmatmul.msk.bf16.gmra.mxu2 %vm153_vm0, %v1260_v34  ;;  %v1785_v34 = vperm.slane %v1722_v61, 3 }
  0x3a   :  { %2774 = vst [vmem:[#allocation34_spill] sm:$0xff] %v1785_v34 }
  0x3f   :  { %1342 = vrot.lane.b32.xlu2 %v1326_v35, %s1530_s27 }
  0x47   :  { %1352 = vrot.lane.b32.xlu2 %v1306_v26, %s1532_s8 }
  0x4f   :  { %616 = vrot.lane.b32.xlu2 %v1590_v17, %s1531_s28 }
  0x79   :  { %v1654_v38 = vpop.permute.xlu2 %1307 }
  0x7a   :  { %v1310_v49 = vunpack.i.h.bf16 %v1654_v38  ;;  %v1309_v50 = vunpack.i.l.bf16 %v1654_v38 }
  0x7c   :  { %v304_v24 = vsel %vm301_vm1, %v1309_v50, %v1310_v49 }
  0x7d   :  { %v1775_v26 = vmul.f32 %v1761_v19, %v304_v24 }
  0x7f   :  { %2773 = vst [vmem:[#allocation33_spill] sm:$0xff] %v1775_v26 }
  0x81   :  { %v1664_v40 = vpop.permute.xlu2 %1317 }
  0x82   :  { %v1320_v28 = vunpack.i.h.bf16 %v1664_v40  ;;  %v1319_v29 = vunpack.i.l.bf16 %v1664_v40 }
  0x89   :  { %v1676_v41 = vpop.permute.xlu2 %1322 }
  0x90   :  { %v1680_v42 = vpop.permute.xlu1 %1292  ;;  %v1692_v46 = vpop.permute.xlu0 %1302 }
  0x91   :  { %v1694_v47 = vpop.permute.xlu2 %1327  ;;  %v2693_v51 = vunpack.i.h.bf16 %v1692_v46  ;;  %v2692_v52 = vunpack.i.l.bf16 %v1692_v46  ;;  %v2686_v55 = vunpack.i.l.bf16 %v1680_v42  ;;  %v2687_v59 = vunpack.i.h.bf16 %v1680_v42 }
  0x92   :  { %v1330_v32 = vunpack.i.h.bf16 %v1694_v47  ;;  %v1329_v33 = vunpack.i.l.bf16 %v1694_v47 }
  0x93   :  { %v1711_v57 = vsel %vm301_vm1, %v1310_v49, %v2692_v52  ;;  %v307_v58 = vsel %vm301_vm1, %v2693_v51, %v1309_v50 }
  0x94   :  { %v1725_v62 = vmul.f32 %v1704_v54, %v307_v58  ;;  %v1802_v58 = vsel %vm445_vm5, %v1319_v29, %v1329_v33 }
  0x96   :  { %2766 = vst [vmem:[#allocation26_spill] sm:$0xff] %v1725_v62 }
  0x98   :  { %v1298_v48 = vpop.permute.xlu1 %1297  ;;  %v1313_v63 = vpop.permute.xlu0 %1312 }
  0x99   :  { %v1300_v56 = vunpack.i.h.bf16 %v1298_v48  ;;  %v1299_v60 = vunpack.i.l.bf16 %v1298_v48  ;;  %v1315_v0 = vunpack.i.h.bf16 %v1313_v63  ;;  %v1314_v1 = vunpack.i.l.bf16 %v1313_v63  ;;  %v1740_v7 = vpop.permute.xlu2 %1342 }
  0x9a   :  { %2769 = vst [vmem:[#allocation29_spill] sm:$0xff] %v1740_v7 }
  0x9b   :  { %v1738_v6 = vsel %vm230_vm2, %v1300_v56, %v2686_v55  ;;  %v236_v9 = vsel %vm230_vm2, %v2687_v59, %v1299_v60  ;;  %v777_v14 = vsel %vm768_vm3, %v1314_v1, %v1315_v0  ;;  %v233_v40 = vsel %vm230_vm2, %v1299_v60, %v1300_v56 }
  0x9c   :  { %2768 = vst [vmem:[#allocation28_spill] sm:$0xff] %v1738_v6  ;;  %v800_v20 = vmul.f32 %v1750_v12, %v777_v14  ;;  %v1768_v25 = vmul.f32 %v1732_v5, %v236_v9  ;;  %v1792_v48 = vmul.f32 %v1785_v34, %v233_v40  ;;  %v1806_v56 = vsel %vm445_vm5, %v1320_v28, %v1319_v29 }
  0x9d   :  { %2778 = vst [vmem:[#allocation38_spill] sm:$0xff] %v1806_v56  ;;  %v1810_v60 = vsel %vm445_vm5, %v1330_v32, %v1320_v28  ;;  %v2684_v9 = vunpack.i.l.bf16 %v1740_v7 }
  0x9e   :  { %2772 = vst [vmem:[#allocation32_spill] sm:$0xff] %v1768_v25  ;;  %v978_v30 = vpack.c.bf16 %v800_v20, %v800_v20  ;;  %v2017_v25 = vld [vmem:[#allocation9 + $0x3] ss:$8 sm:$0xf] }
  0x9f   :  { %2775 = vst [vmem:[#allocation35_spill] sm:$0xff] %v1792_v48 }
  0xa0   :  { %v1333_v2 = vpop.permute.xlu1 %1332  ;;  %v1009_v35 = vsel %vm1007_vm4, %v978_v30, 0  ;;  %2779 = vst [vmem:[#allocation39_spill] sm:$0xff] %v1810_v60 }
  0xa1   :  { %v1335_v3 = vunpack.i.h.bf16 %v1333_v2  ;;  %v1334_v4 = vunpack.i.l.bf16 %v1333_v2  ;;  %1036 = vmatpush.bf16.msra.mxu3 %v1009_v35  ;;  %v1353_v47 = vpop.permute.xlu2 %1352 }
  0xa2   :  { %v1355_v63 = vunpack.i.h.bf16 %v1353_v47  ;;  %v1354_v20 = vunpack.i.l.bf16 %v1353_v47  ;;  %v1884_v47 = vsel %vm445_vm5, %v1329_v33, %v1330_v32 }
  0xa3   :  { %v780_v10 = vsel %vm768_vm3, %v1335_v3, %v1314_v1  ;;  %v771_v11 = vsel %vm768_vm3, %v1334_v4, %v1335_v3  ;;  %v774_v15 = vsel %vm768_vm3, %v1315_v0, %v1334_v4  ;;  %v2688_v1 = vunpack.i.h.bf16 %v1676_v41 }
  0xa4   :  { %v1632_v36 = vpop.f32.mrf.mxu1  ;;  %v801_v23 = vmul.f32 %v1752_v13, %v774_v15  ;;  %v803_v27 = vmul.f32 %v1758_v16, %v780_v10  ;;  %v2689_v3 = vunpack.i.l.bf16 %v1676_v41  ;;  %v2685_v4 = vunpack.i.h.bf16 %v1740_v7 }
  0xa5   :  { %2761 = vst [vmem:[#allocation21_spill] sm:$0xff] %v1632_v36  ;;  %427 = vrot.lane.b32.xlu2 %v1632_v36, %s1528_s25  ;;  %750 = vrot.lane.b32.xlu0 %v1632_v36, %s1529_s26  ;;  %v1826_v10 = vperm.slane %v782_v8, 2  ;;  %v699_v33 = vsel %vm696_vm6, %v1354_v20, %v1355_v63 }
  0xa6   :  { %210 = vrot.lane.b32.xlu1 %v1632_v36, %s1527_s4  ;;  %v979_v31 = vpack.c.bf16 %v801_v23, %v801_v23  ;;  %v981_v43 = vpack.c.bf16 %v803_v27, %v803_v27  ;;  %v1841_v8 = vsel %vm373_vm7, %v2689_v3, %v2684_v9  ;;  %v1849_v24 = vsel %vm373_vm7, %v2685_v4, %v2688_v1  ;;  %v1857_v27 = vld [vmem:[#allocation9 + $0x7] ss:$8 sm:$0xf] }
  0xa7   :  { %2780 = vst [vmem:[#allocation40_spill] sm:$0xff] %v1826_v10  ;;  %v802_v15 = vmul.f32 %v1826_v10, %v771_v11  ;;  %v1862_v29 = vperm.slane %v1857_v27, 1  ;;  %v1865_v30 = vperm.slane %v1857_v27, 3  ;;  %v2801_v10 = vunpack.i.l.bf16 %v1692_v46 }
  0xa8   :  { %v1012_v38 = vsel %vm1007_vm4, %v979_v31, 0  ;;  %v1798_v50 = vsel %vm1007_vm4, %v981_v43, 0  ;;  %v1819_v0 = vpop.permute.xlu1 %1337  ;;  %2781 = vst [vmem:[#allocation41_spill] sm:$0xff] %v1849_v24 }
  0xa9   :  { %1064 = vmatpush.bf16.msrb.mxu1 %v1012_v38  ;;  %2777 = vst [vmem:[#allocation37_spill] sm:$0xff] %v1798_v50  ;;  %v2690_v2 = vunpack.i.l.bf16 %v1819_v0  ;;  %v2691_v23 = vunpack.i.h.bf16 %v1819_v0  ;;  %v1855_v11 = vpop.permute.xlu2 %616  ;;  %v980_v28 = vpack.c.bf16 %v802_v15, %v802_v15 }
  0xaa   :  { %2782 = vst [vmem:[#allocation42_spill] sm:$0xff] %v1855_v11 }
  0xab   :  { %v1646_v37 = vpop.f32.mrf.mxu2  ;;  %v708_v14 = vsel %vm696_vm6, %v1355_v63, %v2690_v2  ;;  %2783 = vst [vmem:[#allocation43_spill] sm:$0xff] %v1862_v29  ;;  %v702_v31 = vsel %vm696_vm6, %v2691_v23, %v1354_v20  ;;  %v1872_v35 = vsel %vm1007_vm4, %v980_v28, 0  ;;  %v1894_v28 = vpop.permute.xlu0 %1347 }
  0xac   :  { %2762 = vst [vmem:[#allocation22_spill] sm:$0xff] %v1646_v37  ;;  %v1656_v39 = vpop.f32.mrf.mxu1  ;;  %v1875_v38 = vmul.f32 %v1862_v29, %v702_v31  ;;  %v1878_v40 = vmul.f32 %v1865_v30, %v708_v14  ;;  %v1907_v14 = vperm.slane %v1857_v27, 2 }
  0xad   :  { %678 = vrot.lane.b32.xlu2 %v1632_v36, %s1532_s8  ;;  %355 = vrot.lane.b32.xlu0 %v1632_v36, %s1530_s27  ;;  %2763 = vst [vmem:[#allocation23_spill] sm:$0xff] %v1656_v39 }
  0xae   :  { %283 = vrot.lane.b32.xlu1 %v1632_v36, %s1526_s3  ;;  %2784 = vst [vmem:[#allocation44_spill] sm:$0xff] %v1865_v30  ;;  %v1918_v4 = vmul.f32 %v1907_v14, %v699_v33 }
  0xaf   :  { %2785 = vst [vmem:[#allocation45_spill] sm:$0xff] %v1872_v35  ;;  %v1974_v35 = vperm.slane %v1700_v53, 1 }
  0xb0   :  { %2786 = vst [vmem:[#allocation46_spill] sm:$0xff] %v1875_v38 }
  0xb1   :  { %2787 = vst [vmem:[#allocation47_spill] sm:$0xff] %v1878_v40  ;;  %v1965_v40 = vld [vmem:[#allocation9 + $0x5] ss:$8 sm:$0xf] }
  0xb2   :  { %2791 = vst [vmem:[#allocation51_spill] sm:$0xff] %v1907_v14  ;;  %v2800_v14 = vunpack.i.h.bf16 %v1692_v46  ;;  %v1987_v38 = vperm.slane %v1965_v40, 0 }
  0xb3   :  { %v1682_v44 = vpop.f32.mrf.mxu2  ;;  %v1915_v9 = vpop.permute.xlu0 %1357  ;;  %2794 = vst [vmem:[#allocation54_spill] sm:$0xff] %v1918_v4  ;;  %v1967_v4 = vld [vmem:[#allocation9 + $0x4] ss:$8 sm:$0xf] }
  0xb4   :  { %2764 = vst [vmem:[#allocation24_spill] sm:$0xff] %v1682_v44  ;;  %v1794_v49 = vpop.f32.mrf.mxu1  ;;  %v496_v30 = vperm.slane %v1967_v4, 0  ;;  %v310_v6 = vsel %vm301_vm1, %v2801_v10, %v2800_v14 }
  0xb5   :  { %606 = vrot.lane.b32.xlu2 %v1632_v36, %s1531_s28  ;;  %204 = vrot.lane.b32.xlu0 %v1646_v37, %s1527_s4  ;;  %2776 = vst [vmem:[#allocation36_spill] sm:$0xff] %v1794_v49  ;;  %v2009_v29 = vmul.f32 %v1974_v35, %v310_v6  ;;  %v2029_v6 = vperm.slane %v2017_v25, 1 }
  0xb6   :  { %534 = vrot.lane.b32.xlu1 %v1632_v36, %s1533_s9  ;;  %2793 = vst [vmem:[#allocation53_spill] sm:$0xff] %v1915_v9  ;;  %v512_v56 = vmul.f32 %v496_v30, %v1594_v21  ;;  %v2011_v21 = vld [vmem:[#allocation9 + $0x2] ss:$8 sm:$0xf]  ;;  %v504_v24 = vmul.f32 %v496_v30, %v1646_v37  ;;  %v508_v7 = vmul.f32 %v496_v30, %v1682_v44 }
  0xb7   :  { %2802 = vst [vmem:[#allocation60_spill] sm:$0xff] %v1987_v38 }
  0xbb   :  { %v1880_v43 = vpop.f32.mrf.mxu2 }
  0xbc   :  { %2788 = vst [vmem:[#allocation48_spill] sm:$0xff] %v1880_v43  ;;  %v1909_v31 = vpop.f32.mrf.mxu1 }
  0xbd   :  { %212 = vrot.lane.b32.xlu2 %v1656_v39, %s1527_s4  ;;  %528 = vrot.lane.b32.xlu0 %v1646_v37, %s1533_s9  ;;  %2792 = vst [vmem:[#allocation52_spill] sm:$0xff] %v1909_v31 }
  0xbe   :  { %277 = vrot.lane.b32.xlu1 %v1646_v37, %s1526_s3 }
  0xc3   :  { %v1936_v59 = vpop.f32.mrf.mxu2 }
  0xc4   :  { %2796 = vst [vmem:[#allocation56_spill] sm:$0xff] %v1936_v59 }
  0xc5   :  { %285 = vrot.lane.b32.xlu2 %v1656_v39, %s1526_s3  ;;  %421 = vrot.lane.b32.xlu0 %v1646_v37, %s1528_s25 }
  0xc6   :  { %744 = vrot.lane.b32.xlu1 %v1646_v37, %s1529_s26 }
  0xcd   :  { %680 = vrot.lane.b32.xlu2 %v1656_v39, %s1532_s8  ;;  %349 = vrot.lane.b32.xlu0 %v1646_v37, %s1530_s27 }
  0xce   :  { %672 = vrot.lane.b32.xlu1 %v1646_v37, %s1532_s8 }
  0xd5   :  { %600 = vrot.lane.b32.xlu0 %v1646_v37, %s1531_s28  ;;  %279 = vrot.lane.b32.xlu2 %v1682_v44, %s1526_s3 }
  0xd6   :  { %752 = vrot.lane.b32.xlu1 %v1656_v39, %s1529_s26 }
  0xdd   :  { %608 = vrot.lane.b32.xlu0 %v1656_v39, %s1531_s28  ;;  %746 = vrot.lane.b32.xlu2 %v1682_v44, %s1529_s26 }
  0xde   :  { %429 = vrot.lane.b32.xlu1 %v1656_v39, %s1528_s25 }
  0xe5   :  { %530 = vrot.lane.b32.xlu2 %v1682_v44, %s1533_s9  ;;  %206 = vrot.lane.b32.xlu0 %v1682_v44, %s1527_s4 }
  0xe6   :  { %357 = vrot.lane.b32.xlu1 %v1656_v39, %s1530_s27 }
  0xed   :  { %222 = vrot.lane.b32.xlu2 %v1794_v49, %s1527_s4  ;;  %674 = vrot.lane.b32.xlu0 %v1682_v44, %s1532_s8 }
  0xee   :  { %536 = vrot.lane.b32.xlu1 %v1656_v39, %s1533_s9 }
  0xf5   :  { %546 = vrot.lane.b32.xlu2 %v1794_v49, %s1533_s9  ;;  %439 = vrot.lane.b32.xlu0 %v1794_v49, %s1528_s25 }
  0xf6   :  { %423 = vrot.lane.b32.xlu1 %v1682_v44, %s1528_s25 }
  0xfd   :  { %367 = vrot.lane.b32.xlu0 %v1794_v49, %s1530_s27  ;;  %216 = vrot.lane.b32.xlu2 %v1880_v43, %s1527_s4 }
  0xfe   :  { %351 = vrot.lane.b32.xlu1 %v1682_v44, %s1530_s27 }
  0xff   :  { %v1892_v15 = vpop.permute.xlu2 %427 }
 0x100   :  { %2789 = vst [vmem:[#allocation49_spill] sm:$0xff] %v1892_v15 }
 0x105   :  { %295 = vrot.lane.b32.xlu0 %v1794_v49, %s1526_s3  ;;  %540 = vrot.lane.b32.xlu2 %v1880_v43, %s1533_s9 }
 0x106   :  { %602 = vrot.lane.b32.xlu1 %v1682_v44, %s1531_s28 }
 0x107   :  { %v1902_v32 = vpop.permute.xlu2 %678 }
 0x108   :  { %2790 = vst [vmem:[#allocation50_spill] sm:$0xff] %v1902_v32 }
 0x10d   :  { %289 = vrot.lane.b32.xlu0 %v1880_v43, %s1526_s3  ;;  %297 = vrot.lane.b32.xlu2 %v1909_v31, %s1526_s3 }
 0x10e   :  { %762 = vrot.lane.b32.xlu1 %v1794_v49, %s1529_s26 }
 0x10f   :  { %v1922_v63 = vpop.permute.xlu2 %606 }
 0x115   :  { %756 = vrot.lane.b32.xlu0 %v1880_v43, %s1529_s26  ;;  %764 = vrot.lane.b32.xlu2 %v1909_v31, %s1529_s26 }
 0x116   :  { %433 = vrot.lane.b32.xlu1 %v1880_v43, %s1528_s25 }
 0x117   :  { %v1930_v20 = vpop.permute.xlu0 %750  ;;  %v1932_v55 = vpop.permute.xlu2 %212 }
 0x118   :  { %2795 = vst [vmem:[#allocation55_spill] sm:$0xff] %v1930_v20  ;;  %v1934_v33 = vpop.permute.xlu1 %210 }
 0x11d   :  { %684 = vrot.lane.b32.xlu0 %v1880_v43, %s1532_s8  ;;  %435 = vrot.lane.b32.xlu2 %v1936_v59, %s1528_s25 }
 0x11e   :  { %369 = vrot.lane.b32.xlu1 %v1909_v31, %s1530_s27 }
 0x11f   :  { %v1944_v1 = vpop.permute.xlu0 %355  ;;  %v1946_v3 = vpop.permute.xlu2 %285 }
 0x120   :  { %2797 = vst [vmem:[#allocation57_spill] sm:$0xff] %v1946_v3  ;;  %v1948_v2 = vpop.permute.xlu1 %283 }
 0x125   :  { %224 = vrot.lane.b32.xlu0 %v1909_v31, %s1527_s4  ;;  %612 = vrot.lane.b32.xlu2 %v1880_v43, %s1531_s28 }
 0x126   :  { %291 = vrot.lane.b32.xlu1 %v1936_v59, %s1526_s3 }
 0x127   :  { %v1956_v23 = vpop.permute.xlu2 %680  ;;  %v205_v52 = vpop.permute.xlu0 %204 }
 0x128   :  { %2798 = vst [vmem:[#allocation58_spill] sm:$0xff] %v1956_v23  ;;  %v1958_v51 = vpop.permute.xlu1 %534  ;;  %v1963_v50 = vsel %vm230_vm2, %v205_v52, %v1934_v33 }
 0x129   :  { %2799 = vst [vmem:[#allocation59_spill] sm:$0xff] %v1963_v50 }
 0x12d   :  { %441 = vrot.lane.b32.xlu0 %v1909_v31, %s1528_s25  ;;  %542 = vrot.lane.b32.xlu2 %v1936_v59, %s1533_s9 }
 0x12e   :  { %758 = vrot.lane.b32.xlu1 %v1936_v59, %s1529_s26 }
 0x12f   :  { %v1989_v13 = vpop.permute.xlu0 %528  ;;  %v1991_v60 = vpop.permute.xlu2 %279 }
 0x130   :  { %v1994_v62 = vpop.permute.xlu1 %277  ;;  %v559_v46 = vsel %vm552_vm8, %v1989_v13, %v1958_v51  ;;  %v309_v10 = vsel %vm301_vm1, %v1991_v60, %v1946_v3 }
 0x131   :  { %v576_v14 = vmul.f32 %v1987_v38, %v559_v46  ;;  %v2006_v26 = vmul.f32 %v1974_v35, %v309_v10  ;;  %v2022_v46 = vperm.slane %v2011_v21, 1 }
 0x133   :  { %v954_v11 = vpack.c.bf16 %v576_v14, %v512_v56  ;;  %v2046_v44 = vmul.f32 %v2022_v46, %v1841_v8 }
 0x135   :  { %1020 = vmatpush.bf16.msrb.mxu2 %v954_v11  ;;  %690 = vrot.lane.b32.xlu2 %v1794_v49, %s1532_s8  ;;  %v950_v11 = vpack.c.bf16 %v508_v7, %v504_v24 }
 0x136   :  { %686 = vrot.lane.b32.xlu1 %v1936_v59, %s1532_s8  ;;  %218 = vrot.lane.b32.xlu0 %v1936_v59, %s1527_s4 }
 0x137   :  { %v2031_v56 = vpop.permute.xlu0 %421  ;;  %v2033_v30 = vpop.permute.xlu2 %746 }
 0x138   :  { %v2035_v10 = vpop.permute.xlu1 %744  ;;  %v452_v14 = vsel %vm445_vm5, %v2031_v56, %v1892_v15 }
 0x139   :  { %2803 = vst [vmem:[#allocation61_spill] sm:$0xff] %v2035_v10  ;;  %v2042_v48 = vmul.f32 %v2029_v6, %v452_v14  ;;  %1021 = vmatpush.bf16.msrb.mxu2 %v950_v11  ;;  %v775_v8 = vsel %vm768_vm3, %v2035_v10, %v1930_v20  ;;  %v712_v10 = vperm.slane %v1857_v27, 0 }
 0x13a   :  { %v792_v54 = vmul.f32 %v1750_v12, %v775_v8 }
 0x13d   :  { %548 = vrot.lane.b32.xlu2 %v1909_v31, %s1533_s9 }
 0x13e   :  { %363 = vrot.lane.b32.xlu1 %v1936_v59, %s1530_s27  ;;  %361 = vrot.lane.b32.xlu0 %v1880_v43, %s1530_s27 }
 0x13f   :  { %v2056_v7 = vpop.permute.xlu0 %349  ;;  %v2058_v24 = vpop.permute.xlu2 %530 }
 0x140   :  { %2804 = vst [vmem:[#allocation62_spill] sm:$0xff] %v2058_v24  ;;  %v2060_v11 = vpop.permute.xlu1 %672 }
 0x141   :  { %2805 = vst [vmem:[#allocation63_spill] sm:$0xff] %v2060_v11  ;;  %v703_v50 = vsel %vm696_vm6, %v2060_v11, %v1902_v32  ;;  %v2817_v11 = vunpack.i.h.bf16 %v1894_v28 }
 0x146   :  { %692 = vrot.lane.b32.xlu1 %v1909_v31, %s1532_s8  ;;  %614 = vrot.lane.b32.xlu0 %v1936_v59, %s1531_s28 }
 0x147   :  { %v2070_v14 = vpop.permute.xlu0 %600  ;;  %v223_v37 = vpop.permute.xlu2 %222 }
 0x148   :  { %2806 = vst [vmem:[#allocation64_spill] sm:$0xff] %v2070_v14  ;;  %v2072_v3 = vpop.permute.xlu1 %752  ;;  %v2076_v15 = vsel %vm230_vm2, %v223_v37, %v205_v52 }
 0x149   :  { %2807 = vst [vmem:[#allocation65_spill] sm:$0xff] %v2072_v3  ;;  %v776_v19 = vsel %vm768_vm3, %v2033_v30, %v2072_v3 }
 0x14a   :  { %2808 = vst [vmem:[#allocation66_spill] sm:$0xff] %v2076_v15  ;;  %v796_v59 = vmul.f32 %v1750_v12, %v776_v19 }
 0x14c   :  { %v974_v43 = vpack.c.bf16 %v796_v59, %v792_v54 }
 0x14e   :  { %1037 = vmatpush.bf16.msra.mxu3 %v974_v43  ;;  %622 = vrot.lane.b32.xlu1 %v1592_v18, %s1531_s28 }
 0x14f   :  { %544 = vrot.lane.b32.xlu0 %v1590_v17, %s1533_s9  ;;  %v2088_v20 = vpop.permute.xlu0 %608  ;;  %v2090_v52 = vpop.permute.xlu2 %546  ;;  %v2120_v17 = vld [vmem:[#allocation9 + $0x6] ss:$8 sm:$0xf] }
 0x150   :  { %2809 = vst [vmem:[#allocation67_spill] sm:$0xff] %v2088_v20  ;;  %v2092_v15 = vpop.permute.xlu1 %429 }
 0x156   :  { %620 = vrot.lane.b32.xlu1 %v1909_v31, %s1531_s28  ;;  %v497_v31 = vperm.slane %v1967_v4, 1 }
 0x157   :  { %618 = vrot.lane.b32.xlu0 %v1794_v49, %s1531_s28  ;;  %v2098_v54 = vpop.permute.xlu0 %206  ;;  %v217_v59 = vpop.permute.xlu2 %216  ;;  %v2116_v49 = vperm.slane %v1965_v40, 1 }
 0x158   :  { %v2100_v12 = vpop.permute.xlu1 %357  ;;  %v231_v19 = vsel %vm230_vm2, %v217_v59, %v223_v37  ;;  %v234_v43 = vsel %vm230_vm2, %v1934_v33, %v217_v59  ;;  %v2813_v33 = vunpack.i.h.bf16 %v1819_v0  ;;  %v2814_v59 = vunpack.i.l.bf16 %v1819_v0 }
 0x159   :  { %v2108_v8 = vmul.f32 %v1732_v5, %v234_v43  ;;  %v2111_v3 = vmul.f32 %v1785_v34, %v231_v19  ;;  %2812 = vst [vmem:[#allocation70_spill] sm:$0xff] %v2116_v49  ;;  %v513_v37 = vmul.f32 %v497_v31, %v1596_v22  ;;  %v2818_v5 = vunpack.i.l.bf16 %v1894_v28 }
 0x15a   :  { %v705_v19 = vsel %vm696_vm6, %v2814_v59, %v2813_v33 }
 0x15b   :  { %2810 = vst [vmem:[#allocation68_spill] sm:$0xff] %v2108_v8  ;;  %v728_v8 = vmul.f32 %v712_v10, %v705_v19  ;;  %v633_v32 = vsel %vm624_vm9, %v2818_v5, %v2817_v11  ;;  %v2820_v5 = vunpack.i.h.bf16 %v1676_v41 }
 0x15c   :  { %2811 = vst [vmem:[#allocation69_spill] sm:$0xff] %v2111_v3  ;;  %v2151_v3 = vperm.slane %v2120_v17, 0 }
 0x15e   :  { %v656_v19 = vmul.f32 %v2151_v3, %v633_v32 }
 0x15f   :  { %550 = vrot.lane.b32.xlu0 %v1592_v18, %s1533_s9  ;;  %v2131_v27 = vpop.permute.xlu0 %674  ;;  %v2133_v43 = vpop.permute.xlu2 %540  ;;  %v509_v18 = vmul.f32 %v497_v31, %v1656_v39  ;;  %v498_v39 = vperm.slane %v1967_v4, 2 }
 0x160   :  { %2815 = vst [vmem:[#allocation71_spill] sm:$0xff] %v2131_v27  ;;  %v2140_v0 = vpop.permute.xlu1 %536  ;;  %v704_v33 = vsel %vm696_vm6, %v2131_v27, %v1956_v23  ;;  %v556_v59 = vsel %vm552_vm8, %v1958_v51, %v2133_v43  ;;  %v720_v27 = vmul.f32 %v712_v10, %v703_v50  ;;  %v2162_v51 = vperm.slane %v1700_v53, 0 }
 0x161   :  { %2816 = vst [vmem:[#allocation72_spill] sm:$0xff] %v2140_v0  ;;  %v724_v22 = vmul.f32 %v712_v10, %v704_v33  ;;  %v577_v34 = vmul.f32 %v2116_v49, %v556_v59  ;;  %v2165_v33 = vperm.slane %v2011_v21, 0  ;;  %v505_v59 = vmul.f32 %v497_v31, %v1632_v36 }
 0x162   :  { %v2819_v49 = vunpack.i.l.bf16 %v1676_v41  ;;  %v2176_v50 = vperm.slane %v2017_v25, 0  ;;  %v2197_v31 = vmul.f32 %v2162_v51, %v1711_v57 }
 0x163   :  { %v970_v23 = vpack.c.bf16 %v728_v8, %v724_v22  ;;  %v955_v38 = vpack.c.bf16 %v577_v34, %v513_v37  ;;  %v478_v37 = vmul.f32 %v2029_v6, %v1802_v58 }
 0x164   :  { %v385_v34 = vsel %vm373_vm7, %v2820_v5, %v2819_v49 }
 0x165   :  { %1038 = vmatpush.bf16.msra.mxu3 %v970_v23  ;;  %1048 = vmatpush.bf16.msra.mxu0 %v955_v38  ;;  %v966_v23 = vpack.c.bf16 %v720_v27, %v656_v19  ;;  %v951_v38 = vpack.c.bf16 %v509_v18, %v505_v59  ;;  %v2193_v49 = vmul.f32 %v2165_v33, %v385_v34 }
 0x166   :  { %v380_v19 = vsel %vm373_vm7, %v2056_v7, %v1944_v1 }
 0x167   :  { %v2178_v53 = vpop.permute.xlu0 %439  ;;  %v2180_v10 = vpop.permute.xlu2 %297 }
 0x168   :  { %v2182_v11 = vpop.permute.xlu1 %423  ;;  %v455_v32 = vsel %vm445_vm5, %v2178_v53, %v2031_v56  ;;  %v312_v41 = vsel %vm301_vm1, %v2180_v10, %v1991_v60 }
 0x169   :  { %v453_v18 = vsel %vm445_vm5, %v2182_v11, %v2092_v15  ;;  %v2204_v8 = vmul.f32 %v2176_v50, %v455_v32  ;;  %v2207_v56 = vmul.f32 %v2162_v51, %v312_v41  ;;  %1039 = vmatpush.bf16.msra.mxu3 %v966_v23  ;;  %1049 = vmatpush.bf16.msra.mxu0 %v951_v38  ;;  %v246_v38 = vperm.slane %v1722_v61, 1 }
 0x16a   :  { %v474_v60 = vmul.f32 %v2029_v6, %v453_v18  ;;  %v398_v32 = vmul.f32 %v2022_v46, %v380_v19  ;;  %v2822_v18 = vpack.c.bf16 %v2042_v48, %v2046_v44  ;;  %v499_v48 = vperm.slane %v1967_v4, 3 }
 0x16b   :  { %v2828_v19 = vpack.c.bf16 %v2009_v29, %v2006_v26 }
 0x16c   :  { %v947_v22 = vpack.c.bf16 %v478_v37, %v474_v60  ;;  %v2823_v60 = vunpack.i.h.bf16 %v1680_v42  ;;  %v2824_v37 = vunpack.i.l.bf16 %v1680_v42  ;;  %v631_v42 = vsel %vm624_vm9, %v2070_v14, %v1922_v63  ;;  %v2831_v14 = vld [vmem:[#allocation20_spill] sm:$0xff] }
 0x16e   :  { %1050 = vmatpush.bf16.msra.mxu0 %v947_v22  ;;  %v239_v22 = vsel %vm230_vm2, %v2824_v37, %v2823_v60 }
 0x16f   :  { %v2220_v59 = vpop.permute.xlu0 %367  ;;  %v2222_v5 = vpop.permute.xlu2 %764  ;;  %v262_v44 = vmul.f32 %v246_v38, %v239_v22  ;;  %v562_v22 = vsel %vm552_vm8, %v2090_v52, %v1989_v13  ;;  %v560_v13 = vsel %vm552_vm8, %v2058_v24, %v2140_v0  ;;  %v2829_v24 = vunpack.i.h.bf16 %v1915_v9 }
 0x170   :  { %v2224_v34 = vpop.permute.xlu1 %351  ;;  %v779_v58 = vsel %vm768_vm3, %v2222_v5, %v2033_v30  ;;  %v2244_v30 = vperm.slane %v2017_v25, 2 }
 0x171   :  { %v381_v6 = vsel %vm373_vm7, %v2224_v34, %v2100_v12  ;;  %v2235_v23 = vmul.f32 %v1758_v16, %v779_v58 }
 0x172   :  { %v402_v41 = vmul.f32 %v2022_v46, %v381_v6  ;;  %1051 = vmatpush.bf16.msra.mxu0 %v2822_v18  ;;  %v308_v46 = vsel %vm301_vm1, %v1994_v62, %v1948_v2  ;;  %v2272_v60 = vmul.f32 %v2244_v30, %v1884_v47 }
 0x173   :  { %2821 = vst [vmem:[#allocation73_spill] sm:$0xff] %v2235_v23  ;;  %v326_v37 = vmul.f32 %v1974_v35, %v308_v46  ;;  %v238_v35 = vsel %vm230_vm2, %v2098_v54, %v1932_v55  ;;  %v648_v46 = vmul.f32 %v2151_v3, %v631_v42 }
 0x174   :  { %v939_v58 = vpack.c.bf16 %v402_v41, %v398_v32  ;;  %v2264_v32 = vperm.slane %v1965_v40, 3 }
 0x175   :  { %v931_v29 = vpack.c.bf16 %v326_v37, %v262_v44 }
 0x176   :  { %1052 = vmatpush.bf16.msra.mxu0 %v939_v58  ;;  %2825 = vst [vmem:[#allocation74_spill] sm:$0xff] %v2264_v32  ;;  %v2280_v58 = vperm.slane %v1965_v40, 2  ;;  %v579_v36 = vmul.f32 %v2264_v32, %v562_v22  ;;  %v2834_v32 = vld [vmem:[#allocation59_spill] sm:$0xff] }
 0x177   :  { %v2266_v41 = vpop.permute.xlu0 %295  ;;  %v2268_v18 = vpop.permute.xlu2 %435  ;;  %v254_v0 = vmul.f32 %v246_v38, %v2834_v32 }
 0x178   :  { %2826 = vst [vmem:[#allocation75_spill] sm:$0xff] %v2280_v58  ;;  %v2282_v27 = vpop.permute.xlu1 %602  ;;  %v450_v57 = vsel %vm445_vm5, %v2092_v15, %v2268_v18  ;;  %v553_v15 = vsel %vm552_vm8, %v2133_v43, %v2090_v52  ;;  %v2832_v43 = vld [vmem:[#allocation60_spill] sm:$0xff] }
 0x179   :  { %2827 = vst [vmem:[#allocation76_spill] sm:$0xff] %v2282_v27  ;;  %v632_v40 = vsel %vm624_vm9, %v2282_v27, %v2088_v20  ;;  %v475_v47 = vmul.f32 %v2244_v30, %v450_v57  ;;  %v2830_v57 = vunpack.i.l.bf16 %v1915_v9  ;;  %v515_v27 = vmul.f32 %v499_v48, %v2831_v14 }
 0x17a   :  { %v652_v6 = vmul.f32 %v2151_v3, %v632_v40  ;;  %1053 = vmatpush.bf16.msra.mxu0 %v2828_v19  ;;  %v258_v3 = vmul.f32 %v246_v38, %v238_v35  ;;  %v580_v40 = vmul.f32 %v2832_v43, %v560_v13  ;;  %v578_v4 = vmul.f32 %v2280_v58, %v553_v15  ;;  %v2833_v19 = vld [vmem:[#allocation19_spill] sm:$0xff]  ;;  %v2862_v58 = vld [vmem:[#allocation30_spill] sm:$0xff] }
 0x17b   :  { %v561_v42 = vsel %vm552_vm8, %v2830_v57, %v2829_v24  ;;  %v948_v52 = vpack.c.bf16 %v2272_v60, %v475_v47  ;;  %v514_v22 = vmul.f32 %v498_v39, %v2833_v19  ;;  %v2835_v24 = vld [vmem:[#allocation36_spill] sm:$0xff]  ;;  %v957_v20 = vpack.c.bf16 %v579_v36, %v515_v27 }
 0x17c   :  { %v962_v26 = vpack.c.bf16 %v652_v6, %v648_v46  ;;  %v584_v9 = vmul.f32 %v2832_v43, %v561_v42  ;;  %v507_v57 = vmul.f32 %v499_v48, %v2835_v24  ;;  %v2836_v60 = vld [vmem:[#allocation48_spill] sm:$0xff]  ;;  %v927_v15 = vpack.c.bf16 %v258_v3, %v254_v0  ;;  %v2839_v42 = vld [vmem:[#allocation61_spill] sm:$0xff]  ;;  %v2844_v0 = vld [vmem:[#allocation35_spill] sm:$0xff] }
 0x17d   :  { %v506_v35 = vmul.f32 %v498_v39, %v2836_v60  ;;  %v2837_v47 = vld [vmem:[#allocation56_spill] sm:$0xff]  ;;  %v1249_v3 = vld [vmem:[#allocation8] sm:$0xf]  ;;  %v2861_v60 = vld [vmem:[#allocation39_spill] sm:$0xff] }
 0x17e   :  { %1040 = vmatpush.bf16.msra.mxu3 %v962_v26  ;;  %1054 = vmatpush.bf16.msra.mxu0 %v931_v29  ;;  %v510_v13 = vmul.f32 %v498_v39, %v2837_v47  ;;  %v2838_v6 = vld [vmem:[#allocation52_spill] sm:$0xff]  ;;  %v958_v46 = vpack.c.bf16 %v584_v9, %v580_v40  ;;  %v2840_v39 = vld [vmem:[#allocation25_spill] sm:$0xff]  ;;  %v956_v26 = vpack.c.bf16 %v578_v4, %v514_v22  ;;  %v2357_v4 = vperm.slane %v2011_v21, 2 }
 0x17f   :  { %v290_v14 = vpop.permute.xlu0 %289  ;;  %v511_v44 = vmul.f32 %v499_v48, %v2838_v6  ;;  %v2841_v48 = vld [vmem:[#allocation31_spill] sm:$0xff]  ;;  %v2845_v22 = vld [vmem:[#allocation29_spill] sm:$0xff] }
 0x180   :  { %v2329_v37 = vpop.permute.xlu1 %762  ;;  %v302_v38 = vsel %vm301_vm1, %v290_v14, %v2266_v41  ;;  %v305_v32 = vsel %vm301_vm1, %v1948_v2, %v290_v14  ;;  %v2843_v2 = vld [vmem:[#allocation32_spill] sm:$0xff]  ;;  %v952_v19 = vpack.c.bf16 %v510_v13, %v506_v35  ;;  %v464_v35 = vperm.slane %v2017_v25, 3  ;;  %v2856_v9 = vld [vmem:[#allocation33_spill] sm:$0xff] }
 0x181   :  { %v778_v36 = vsel %vm768_vm3, %v2329_v37, %v2839_v42  ;;  %v2342_v27 = vmul.f32 %v2840_v39, %v305_v32  ;;  %v2345_v43 = vmul.f32 %v2841_v48, %v302_v38  ;;  %v953_v14 = vpack.c.bf16 %v511_v44, %v507_v57 }
 0x182   :  { %v2348_v29 = vmul.f32 %v1758_v16, %v778_v36  ;;  %1041 = vmatpush.bf16.msra.mxu3 %v958_v46  ;;  %1055 = vmatpush.bf16.msra.mxu0 %v927_v15  ;;  %v2360_v16 = vperm.slane %v2011_v21, 3  ;;  %v2846_v38 = vunpack.i.h.bf16 %v2845_v22  ;;  %v2847_v32 = vunpack.i.l.bf16 %v2845_v22  ;;  %v2848_v21 = vld [vmem:[#allocation49_spill] sm:$0xff]  ;;  %v2850_v22 = vld [vmem:[#allocation42_spill] sm:$0xff] }
 0x183   :  { %v480_v24 = vmul.f32 %v464_v35, %v2861_v60  ;;  %v2479_v60 = vpop.permute.xlu2 %612 }
 0x184   :  { %2842 = vst [vmem:[#allocation20_spill] sm:$0xff] %v2348_v29  ;;  %v379_v46 = vsel %vm373_vm7, %v2847_v32, %v2846_v38  ;;  %v2851_v38 = vunpack.i.h.bf16 %v1894_v28 }
 0x185   :  { %v407_v36 = vmul.f32 %v2357_v4, %v379_v46 }
 0x186   :  { %1076 = vmatpush.bf16.msrb.mxu3 %v956_v26  ;;  %1104 = vmatpush.bf16.msrb.mxu0 %v957_v20  ;;  %v2849_v26 = vld [vmem:[#allocation41_spill] sm:$0xff] }
 0x187   :  { %v2362_v20 = vpop.permute.xlu0 %756 }
 0x188   :  { %v434_v57 = vpop.permute.xlu1 %433 }
 0x189   :  { %v446_v13 = vsel %vm445_vm5, %v434_v57, %v2178_v53  ;;  %v449_v44 = vsel %vm445_vm5, %v2848_v21, %v434_v57  ;;  %v2388_v53 = vperm.slane %v2120_v17, 1 }
 0x18a   :  { %1077 = vmatpush.bf16.msrb.mxu3 %v952_v19  ;;  %1105 = vmatpush.bf16.msrb.mxu0 %v953_v14  ;;  %v471_v15 = vmul.f32 %v2244_v30, %v449_v44  ;;  %v2378_v42 = vmul.f32 %v464_v35, %v446_v13  ;;  %v2383_v19 = vmul.f32 %v2360_v16, %v2849_v26  ;;  %v2853_v13 = vld [vmem:[#allocation43_spill] sm:$0xff] }
 0x18b   :  { %v630_v30 = vsel %vm624_vm9, %v2851_v38, %v2850_v22 }
 0x18c   :  { %v944_v25 = vpack.c.bf16 %v471_v15, %v407_v36  ;;  %v945_v14 = vpack.c.bf16 %v2378_v42, %v2383_v19  ;;  %v2407_v44 = vmul.f32 %v2388_v53, %v630_v30  ;;  %v2412_v42 = vperm.slane %v1722_v61, 0 }
 0x18e   :  { %1078 = vmatpush.bf16.msrb.mxu3 %v948_v52  ;;  %v2852_v52 = vld [vmem:[#allocation50_spill] sm:$0xff] }
 0x18f   :  { %v2395_v32 = vpop.permute.xlu0 %684 }
 0x190   :  { %v2397_v46 = vpop.permute.xlu1 %369  ;;  %v700_v57 = vsel %vm696_vm6, %v2852_v52, %v2395_v32 }
 0x191   :  { %v2404_v21 = vmul.f32 %v2853_v13, %v700_v57  ;;  %v2855_v57 = vld [vmem:[#allocation57_spill] sm:$0xff] }
 0x192   :  { %1079 = vmatpush.bf16.msrb.mxu3 %v944_v25  ;;  %v2854_v25 = vld [vmem:[#allocation66_spill] sm:$0xff] }
 0x193   :  { %v2419_v38 = vmul.f32 %v2412_v42, %v2854_v25  ;;  %v2860_v25 = vld [vmem:[#allocation65_spill] sm:$0xff] }
 0x197   :  { %v225_v36 = vpop.permute.xlu0 %224 }
 0x198   :  { %v241_v26 = vsel %vm230_vm2, %v225_v36, %v2098_v54  ;;  %v292_v19 = vpop.permute.xlu1 %291 }
 0x199   :  { %v2422_v52 = vmul.f32 %v2412_v42, %v241_v26  ;;  %v303_v30 = vsel %vm301_vm1, %v292_v19, %v2180_v10  ;;  %v306_v61 = vsel %vm301_vm1, %v2855_v57, %v292_v19  ;;  %v1270_v26 = vld [vmem:[#allocation8 + $0x4] sm:$0xf0]  ;;  %v1269_v19 = vld [vmem:[#allocation8 + $0x4] sm:$0xf]  ;;  %v1251_v57 = vld [vmem:[#allocation8 + $0x8] sm:$0xf0] }
 0x19a   :  { %v2431_v40 = vmul.f32 %v2841_v48, %v303_v30  ;;  %v2434_v54 = vmul.f32 %v2840_v39, %v306_v61  ;;  %v2440_v47 = vor.u32 %v1270_v26, %v1249_v3  ;;  %v2857_v10 = vld [vmem:[#allocation26_spill] sm:$0xff]  ;;  %v2444_v48 = vor.u32 %v1269_v19, %v1251_v57  ;;  %v2858_v39 = vld [vmem:[#allocation55_spill] sm:$0xff] }
 0x19b   :  { %v772_v30 = vsel %vm768_vm3, %v2858_v39, %v2362_v20  ;;  %v2859_v19 = vld [vmem:[#allocation38_spill] sm:$0xff] }
 0x19c   :  { %1056 = vmatmul.bf16.vlgmr.msra.gmra.mxu0 %v2440_v47  ;;  %v477_v57 = vmul.f32 %v2176_v50, %v2859_v19  ;;  %1255 = vmatmul.msk.bf16.vlgmr.msra.gmra.mxu3 %vm1003_vm10, %v2444_v48  ;;  %v384_v19 = vsel %vm373_vm7, %v2397_v46, %v2224_v34 }
 0x19f   :  { %v442_v61 = vpop.permute.xlu0 %441 }
 0x1a0   :  { %v447_v3 = vsel %vm445_vm5, %v2268_v18, %v442_v61  ;;  %v456_v26 = vsel %vm445_vm5, %v442_v61, %v2182_v11  ;;  %v2457_v15 = vpop.permute.xlu1 %758  ;;  %v793_v11 = vmul.f32 %v2862_v58, %v772_v30 }
 0x1a1   :  { %v473_v39 = vmul.f32 %v2176_v50, %v456_v26  ;;  %v476_v6 = vmul.f32 %v464_v35, %v447_v3  ;;  %v773_v18 = vsel %vm768_vm3, %v2860_v25, %v2457_v15  ;;  %v383_v3 = vsel %vm373_vm7, %v2220_v59, %v2056_v7  ;;  %v2863_v25 = vld [vmem:[#allocation58_spill] sm:$0xff] }
 0x1a2   :  { %v797_v61 = vmul.f32 %v2862_v58, %v773_v18  ;;  %v401_v58 = vmul.f32 %v2165_v33, %v384_v19  ;;  %v1534_v19 = vmov 0  }
 0x1a3   :  { %v946_v29 = vpack.c.bf16 %v477_v57, %v473_v39  ;;  %v949_v23 = vpack.c.bf16 %v480_v24, %v476_v6  ;;  %v397_v24 = vmul.f32 %v2165_v33, %v383_v3  ;;  %v2866_v57 = vld [vmem:[#allocation34_spill] sm:$0xff]  ;;  %1361 = vset.pattern.permute.xlu1 %v1534_v19  ;;  %1362 = vset.pattern.permute.xlu2 %v1534_v19  ;;  %v2870_v3 = vld [vmem:[#allocation28_spill] sm:$0xff] }
 0x1a4   :  { %v975_v50 = vpack.c.bf16 %v797_v61, %v793_v11  ;;  %v2868_v61 = vld [vmem:[#allocation68_spill] sm:$0xff]  ;;  %1363 = vset.pattern.permute.xlu0 %v1534_v19 }
 0x1a5   :  { %1022 = vmatpush.bf16.msrb.mxu2 %v946_v29  ;;  %1106 = vmatpush.bf16.msrb.mxu0 %v949_v23  ;;  %v2864_v23 = vpack.c.bf16 %v2204_v8, %v2193_v49  ;;  %v2865_v29 = vld [vmem:[#allocation27_spill] sm:$0xff]  ;;  %v938_v18 = vpack.c.bf16 %v401_v58, %v397_v24  ;;  %v2869_v8 = vld [vmem:[#allocation69_spill] sm:$0xff]  ;;  %v261_v58 = vmul.f32 %v2412_v42, %v2870_v3  ;;  %v2531_v42 = vpop.permute.xlu2 %542  ;;  %v2882_v3 = vld [vmem:[#allocation54_spill] sm:$0xff] }
 0x1a6   :  { %1065 = vmatpush.bf16.msrb.mxu1 %v975_v50 }
 0x1a8   :  { %v687_v6 = vpop.permute.xlu1 %686  ;;  %v219_v35 = vpop.permute.xlu0 %218 }
 0x1a9   :  { %v701_v34 = vsel %vm696_vm6, %v2863_v25, %v687_v6  ;;  %v232_v30 = vsel %vm230_vm2, %v219_v35, %v225_v36  ;;  %v235_v7 = vsel %vm230_vm2, %v1932_v55, %v219_v35  ;;  %1023 = vmatpush.bf16.msrb.mxu2 %v2864_v23  ;;  %1107 = vmatpush.bf16.msrb.mxu0 %v945_v14  ;;  %v2867_v55 = vld [vmem:[#allocation46_spill] sm:$0xff] }
 0x1aa   :  { %v725_v33 = vmul.f32 %v2853_v13, %v701_v34  ;;  %v2496_v26 = vmul.f32 %v2865_v29, %v235_v7  ;;  %v2499_v39 = vmul.f32 %v2866_v57, %v232_v30  ;;  %v311_v36 = vsel %vm301_vm1, %v2266_v41, %v1994_v62  ;;  %v982_v13 = vld [vmem:[%s2681_s5] sm:$0xff]  ;;  %v2873_v29 = vld [vmem:[#allocation40_spill] sm:$0xff] }
 0x1ab   :  { %986 = vperm.xlu1 %1361, %v982_v13   ;;  %v325_v62 = vmul.f32 %v2162_v51, %v311_v36  ;;  %v2871_v34 = vpack.c.bf16 %v2197_v31, %v2207_v56  ;;  %v628_v31 = vsel %vm624_vm9, %v1922_v63, %v2479_v60  ;;  %v770_v56 = vsel %vm768_vm3, %v2457_v15, %v2222_v5  ;;  %v2874_v36 = vld [vmem:[#allocation71_spill] sm:$0xff] }
 0x1ac   :  { %v971_v11 = vpack.c.bf16 %v2867_v55, %v725_v33  ;;  %v928_v49 = vpack.c.bf16 %v2496_v26, %v2868_v61  ;;  %v929_v14 = vpack.c.bf16 %v2499_v39, %v2869_v8  ;;  %v798_v57 = vmul.f32 %v2873_v29, %v770_v56  ;;  %v2875_v15 = vld [vmem:[#allocation67_spill] sm:$0xff] }
 0x1ad   :  { %1024 = vmatpush.bf16.msrb.mxu2 %v938_v18  ;;  %v930_v23 = vpack.c.bf16 %v325_v62, %v261_v58  ;;  %v2876_v55 = vpack.c.bf16 %v2422_v52, %v2419_v38  ;;  %v2880_v62 = vpack.c.bf16 %v2856_v9, %v2431_v40  ;;  %v691_v38 = vpop.permute.xlu2 %690  ;;  %v642_v9 = vperm.slane %v2120_v17, 2 }
 0x1ae   :  { %1066 = vmatpush.bf16.msrb.mxu1 %v971_v11  ;;  %v2878_v11 = vld [vmem:[#allocation44_spill] sm:$0xff]  ;;  %v697_v40 = vsel %vm696_vm6, %v2395_v32, %v691_v38 }
 0x1b0   :  { %v364_v41 = vpop.permute.xlu1 %363  ;;  %v362_v50 = vpop.permute.xlu0 %361 }
 0x1b1   :  { %v375_v24 = vsel %vm373_vm7, %v364_v41, %v2397_v46  ;;  %v378_v35 = vsel %vm373_vm7, %v2100_v12, %v364_v41  ;;  %v374_v25 = vsel %vm373_vm7, %v362_v50, %v2220_v59  ;;  %v377_v51 = vsel %vm373_vm7, %v1944_v1, %v362_v50  ;;  %1025 = vmatpush.bf16.msrb.mxu2 %v2871_v34  ;;  %v2881_v50 = vld [vmem:[#allocation45_spill] sm:$0xff] }
 0x1b2   :  { %v403_v46 = vmul.f32 %v2357_v4, %v378_v35  ;;  %v404_v30 = vmul.f32 %v2360_v16, %v375_v24  ;;  %v399_v12 = vmul.f32 %v2357_v4, %v377_v51  ;;  %v400_v7 = vmul.f32 %v2360_v16, %v374_v25  ;;  %v2883_v24 = vld [vmem:[#allocation47_spill] sm:$0xff]  ;;  %v983_v25 = vld [vmem:[%s2681_s5 + $0x8] sm:$0xff]  ;;  %s1535_s5 = smov [#allocation11]  }
 0x1b3   :  { %v2872_v59 = vpack.c.bf16 %v2404_v21, %v2407_v44  ;;  %v649_v4 = vmul.f32 %v2388_v53, %v628_v31  ;;  %v769_v16 = vsel %vm768_vm3, %v2362_v20, %v2329_v37  ;;  %v2877_v37 = vld [vmem:[#allocation51_spill] sm:$0xff]  ;;  %v2886_v51 = vld [vmem:[#allocation72_spill] sm:$0xff]  ;;  %991 = vperm.xlu2 %1362, %v983_v25   ;;  %v643_v31 = vperm.slane %v2120_v17, 3  ;;  %s1168_s13 = sshll.u32 %s1535_s5, 4  ;;  %s1169_s13 = int_to_ptr.vmem [resolvable:$true] %s1168_s13 }
 0x1b4   :  { %v940_v1 = vpack.c.bf16 %v403_v46, %v399_v12  ;;  %v941_v33 = vpack.c.bf16 %v404_v30, %v400_v7  ;;  %v794_v41 = vmul.f32 %v2873_v29, %v769_v16  ;;  %v2887_v46 = vld [vmem:[#allocation53_spill] sm:$0xff]  ;;  %v2889_v7 = vld [vmem:[#allocation70_spill] sm:$0xff]  ;;  %v2893_v16 = vld [vmem:[#allocation20_spill] sm:$0xff] }
 0x1b5   :  { %1067 = vmatpush.bf16.msrb.mxu1 %v2872_v59  ;;  %1026 = vmatpush.bf16.msrb.mxu2 %v930_v23  ;;  %v2888_v30 = vunpack.i.h.bf16 %v2887_v46  ;;  %v549_v29 = vpop.permute.xlu2 %548 }
 0x1b6   :  { %1080 = vmatpush.bf16.msrb.mxu3 %v940_v1  ;;  %1108 = vmatpush.bf16.msrb.mxu0 %v941_v33  ;;  %v976_v35 = vpack.c.bf16 %v798_v57, %v794_v41  ;;  %v2890_v33 = vld [vmem:[#allocation37_spill] sm:$0xff]  ;;  %v2899_v41 = vunpack.i.l.bf16 %v2887_v46 }
 0x1b8   :  { %v693_v21 = vpop.permute.xlu1 %692  ;;  %v615_v44 = vpop.permute.xlu0 %614 }
 0x1b9   :  { %v698_v63 = vsel %vm696_vm6, %v687_v6, %v693_v21  ;;  %v707_v5 = vsel %vm696_vm6, %v693_v21, %v2874_v36  ;;  %v629_v18 = vsel %vm624_vm9, %v2875_v15, %v615_v44  ;;  %1027 = vmatpush.bf16.msrb.mxu2 %v2876_v55  ;;  %v2879_v6 = vpack.c.bf16 %v2857_v10, %v2434_v54 }
 0x1ba   :  { %v726_v20 = vmul.f32 %v2877_v37, %v698_v63  ;;  %v727_v13 = vmul.f32 %v2878_v11, %v707_v5  ;;  %v653_v19 = vmul.f32 %v2388_v53, %v629_v18  ;;  %1109 = vmatpush.bf16.msrb.mxu0 %v2880_v62  ;;  %v2884_v54 = vpack.c.bf16 %v2342_v27, %v2843_v2  ;;  %v2896_v63 = vld [vmem:[#allocation76_spill] sm:$0xff] }
 0x1bb   :  { %1081 = vmatpush.bf16.msrb.mxu3 %v2879_v6  ;;  %v2885_v10 = vpack.c.bf16 %v2345_v43, %v2844_v0  ;;  %v557_v27 = vsel %vm552_vm8, %v2886_v51, %v2531_v42  ;;  %v722_v43 = vmul.f32 %v2877_v37, %v697_v40  ;;  %v554_v18 = vsel %vm552_vm8, %v2531_v42, %v549_v29  ;;  %v2898_v6 = vld [vmem:[#allocation75_spill] sm:$0xff] }
 0x1bc   :  { %1028 = vmatmul.bf16.vlgmr.msrb.gmra.mxu2 %v2440_v47  ;;  %v963_v52 = vpack.c.bf16 %v653_v19, %v649_v4  ;;  %v972_v58 = vpack.c.bf16 %v2882_v3, %v726_v20  ;;  %v973_v53 = vpack.c.bf16 %v2883_v24, %v727_v13  ;;  %v581_v59 = vmul.f32 %v2889_v7, %v557_v27  ;;  %v2892_v4 = vld [vmem:[#allocation73_spill] sm:$0xff]  ;;  %v2901_v3 = vld [vmem:[#allocation74_spill] sm:$0xff] }
 0x1bd   :  { %1092 = vmatpush.bf16.msra.mxu2 %v2881_v50  ;;  %v2894_v21 = vpack.c.bf16 %v2892_v4, %v2893_v16  ;;  %v582_v62 = vmul.f32 %v2898_v6, %v554_v18 }
 0x1be   :  { %1068 = vmatpush.bf16.msrb.mxu1 %v963_v52  ;;  %1110 = vmatpush.bf16.msrb.mxu0 %v2885_v10 }
 0x1bf   :  { %1082 = vmatpush.bf16.msrb.mxu3 %v2884_v54 }
 0x1c0   :  { %v623_v2 = vpop.permute.xlu1 %622 }
 0x1c1   :  { %1093 = vmatpush.bf16.msra.mxu2 %v976_v35  ;;  %v627_v32 = vsel %vm624_vm9, %v2850_v22, %v623_v2  ;;  %v545_v34 = vpop.permute.xlu0 %544 }
 0x1c2   :  { %v658_v0 = vmul.f32 %v642_v9, %v627_v32  ;;  %v558_v12 = vsel %vm552_vm8, %v2888_v30, %v545_v34  ;;  %1111 = vmatpush.bf16.msrb.mxu0 %v929_v14  ;;  %v2902_v32 = vld [vmem:[#allocation22_spill] sm:$0xff] }
 0x1c3   :  { %1083 = vmatpush.bf16.msrb.mxu3 %v928_v49  ;;  %v585_v23 = vmul.f32 %v2889_v7, %v558_v12 }
 0x1c4   :  { %v968_v22 = vpack.c.bf16 %v722_v43, %v658_v0 }
 0x1c5   :  { %1094 = vmatpush.bf16.msra.mxu2 %v972_v58  ;;  %v959_v1 = vpack.c.bf16 %v585_v23, %v581_v59  ;;  %1112 = vmatmul.bf16.vlgmr.msrb.gmra.mxu0 %v2440_v47  ;;  %v2903_v23 = vld [vmem:[#allocation21_spill] sm:$0xff] }
 0x1c6   :  { %1084 = vmatmul.bf16.vlgmr.msrb.gmra.mxu3 %v2440_v47  ;;  %v2891_v47 = vunpack.i.l.bf16 %v1894_v28  ;;  %v2897_v28 = vld [vmem:[#allocation64_spill] sm:$0xff] }
 0x1c7   :  { %1069 = vmatpush.bf16.msrb.mxu1 %v959_v1 }
 0x1c8   :  { %v621_v26 = vpop.permute.xlu1 %620  ;;  %v636_v14 = vsel %vm624_vm9, %v623_v2, %v2891_v47 }
 0x1c9   :  { %1095 = vmatpush.bf16.msra.mxu2 %v968_v22  ;;  %v626_v61 = vsel %vm624_vm9, %v615_v44, %v621_v26  ;;  %v619_v49 = vpop.permute.xlu0 %618  ;;  %v2895_v44 = vld [vmem:[#allocation63_spill] sm:$0xff]  ;;  %v635_v36 = vsel %vm624_vm9, %v621_v26, %v2896_v63 }
 0x1ca   :  { %v654_v39 = vmul.f32 %v642_v9, %v626_v61  ;;  %v625_v8 = vsel %vm624_vm9, %v2479_v60, %v619_v49  ;;  %1256 = vmatmul.msk.bf16.vlgmr.msrb.gmra.mxu1 %vm1003_vm10, %v2444_v48  ;;  %v706_v17 = vsel %vm696_vm6, %v691_v38, %v2895_v44  ;;  %v659_v60 = vmul.f32 %v643_v31, %v636_v14  ;;  %v2900_v38 = vld [vmem:[#allocation62_spill] sm:$0xff] }
 0x1cb   :  { %1120 = vmatpush.bf16.msra.mxu1 %v2890_v33  ;;  %v650_v56 = vmul.f32 %v642_v9, %v625_v8  ;;  %v634_v5 = vsel %vm624_vm9, %v619_v49, %v2897_v28  ;;  %v723_v15 = vmul.f32 %v2878_v11, %v706_v17  ;;  %v655_v37 = vmul.f32 %v643_v31, %v635_v36  ;;  %v2904_v33 = vld [vmem:[#allocation24_spill] sm:$0xff]  ;;  %v2905_v8 = vld [vmem:[#allocation23_spill] sm:$0xff] }
 0x1cc   :  { %v651_v20 = vmul.f32 %v643_v31, %v634_v5  ;;  %v563_v42 = vsel %vm552_vm8, %v549_v29, %v2900_v38  ;;  %v2906_v28 = vld [vmem:[#allocation36_spill] sm:$0xff] }
 0x1cd   :  { %v964_v57 = vpack.c.bf16 %v654_v39, %v650_v56  ;;  %v969_v19 = vpack.c.bf16 %v723_v15, %v659_v60  ;;  %v2907_v15 = vld [vmem:[#allocation48_spill] sm:$0xff] }
 0x1ce   :  { %v965_v24 = vpack.c.bf16 %v655_v37, %v651_v20  ;;  %v2909_v38 = vld [vmem:[#allocation56_spill] sm:$0xff] }
 0x1cf   :  { %1121 = vmatpush.bf16.msra.mxu1 %v2894_v21  ;;  %1096 = vmatpush.bf16.msra.mxu2 %v964_v57 }
 0x1d1   :  { %v551_v55 = vpop.permute.xlu0 %550 }
 0x1d2   :  { %v555_v13 = vsel %vm552_vm8, %v545_v34, %v551_v55  ;;  %v564_v50 = vsel %vm552_vm8, %v551_v55, %v2899_v41 }
 0x1d3   :  { %1122 = vmatpush.bf16.msra.mxu1 %v973_v53  ;;  %v586_v11 = vmul.f32 %v2898_v6, %v555_v13  ;;  %v587_v58 = vmul.f32 %v2901_v3, %v564_v50  ;;  %v583_v53 = vmul.f32 %v2901_v3, %v563_v42  ;;  %v2908_v50 = vld [vmem:[#allocation52_spill] sm:$0xff] }
 0x1d5   :  { %v960_v52 = vpack.c.bf16 %v586_v11, %v582_v62  ;;  %v961_v35 = vpack.c.bf16 %v587_v58, %v583_v53 }
 0x1d7   :  { %1123 = vmatpush.bf16.msra.mxu1 %v969_v19  ;;  %1097 = vmatpush.bf16.msra.mxu2 %v960_v52 }
 0x1da   :  { %1257 = vmatmul.msk.bf16.vlgmr.msra.gmra.mxu2 %vm1003_vm10, %v2444_v48 }
 0x1db   :  { %1124 = vmatpush.bf16.msra.mxu1 %v965_v24 }
 0x1df   :  { %1125 = vmatpush.bf16.msra.mxu1 %v961_v35 }
 0x1e2   :  { %1258 = vmatmul.msk.bf16.vlgmr.msra.gmra.mxu1 %vm1003_vm10, %v2444_v48 }
 0x20d   :  { %v992_v2 = vpop.permute.xlu2 %991 }
 0x219   :  { %v1057_v10 = vpop.f32.mrf.mxu0 }
 0x21d   :  { %v987_v9 = vpop.permute.xlu1 %986 }
 0x21e   :  { %v1058_v27 = vadd.f32 %v1057_v10, %v987_v9 }
 0x21f   :  { %v1043_v54 = vpop.f32.mrf.mxu3 }
 0x221   :  { %v1059_v59 = vpop.f32.mrf.mxu0 }
 0x222   :  { %v1060_v61 = vadd.f32 %v1059_v59, %v992_v2 }
 0x227   :  { %v1045_v43 = vpop.f32.mrf.mxu3 }
 0x23f   :  { %v1029_v45 = vpop.f32.mrf.mxu2 }
 0x240   :  { %v1030_v40 = vadd.f32 %v1029_v45, %v987_v9 }
 0x242   :  { %v1044_v25 = vadd.f32 %v1043_v54, %v1030_v40  ;;  %v1113_v14 = vpop.f32.mrf.mxu0 }
 0x243   :  { %v1114_v4 = vadd.f32 %v1113_v14, %v987_v9 }
 0x244   :  { %v1132_v51 = vmax.f32 %v1044_v25, 0.0 }
 0x246   :  { %1140 = vst [vmem:[#allocation11] sm:$0xff] %v1132_v51  ;;  %v1144_v34 = vsub.f32 %v2902_v32, %v1132_v51 }
 0x247   :  { %v1071_v0 = vpop.f32.mrf.mxu1  ;;  %v1031_v46 = vpop.f32.mrf.mxu2 }
 0x248   :  { %1148 = vst [vmem:[#allocation12] sm:$0xff] %v1144_v34  ;;  %v1072_v30 = vadd.f32 %v1071_v0, %v1058_v27  ;;  %v1032_v12 = vadd.f32 %v1031_v46, %v992_v2 }
 0x249   :  { %v1085_v56 = vpop.f32.mrf.mxu3 }
 0x24a   :  { %v1133_v7 = vmax.f32 %v1072_v30, 0.0  ;;  %v1046_v48 = vadd.f32 %v1045_v43, %v1032_v12  ;;  %v1086_v16 = vadd.f32 %v1085_v56, %v987_v9  ;;  %v1115_v60 = vpop.f32.mrf.mxu0 }
 0x24b   :  { %v1116_v55 = vadd.f32 %v1115_v60, %v992_v2 }
 0x24c   :  { %1141 = vst [vmem:[#allocation11 + $0x8] sm:$0xff] %v1133_v7  ;;  %v1145_v22 = vsub.f32 %v2903_v23, %v1133_v7  ;;  %v1136_v1 = vmax.f32 %v1046_v48, 0.0 }
 0x24e   :  { %1149 = vst [vmem:[#allocation12 + $0x8] sm:$0xff] %v1145_v22  ;;  %v1146_v26 = vsub.f32 %v2904_v33, %v1136_v1 }
 0x24f   :  { %1142 = vst [vmem:[#allocation11 + $0x10] sm:$0xff] %v1136_v1  ;;  %v1073_v49 = vpop.f32.mrf.mxu1 }
 0x250   :  { %1150 = vst [vmem:[#allocation12 + $0x10] sm:$0xff] %v1146_v26  ;;  %v1074_v31 = vadd.f32 %v1073_v49, %v1060_v61 }
 0x251   :  { %v1087_v36 = vpop.f32.mrf.mxu3 }
 0x252   :  { %v1137_v39 = vmax.f32 %v1074_v31, 0.0  ;;  %v1088_v37 = vadd.f32 %v1087_v36, %v992_v2 }
 0x254   :  { %1143 = vst [vmem:[#allocation11 + $0x18] sm:$0xff] %v1137_v39  ;;  %v1147_v47 = vsub.f32 %v2905_v8, %v1137_v39 }
 0x256   :  { %1151 = vst [vmem:[#allocation12 + $0x18] sm:$0xff] %v1147_v47 }
 0x25d   :  { %v1099_v17 = vpop.f32.mrf.mxu2 }
 0x25e   :  { %v1100_v29 = vadd.f32 %v1099_v17, %v1086_v16 }
 0x25f   :  { %v1127_v21 = vpop.f32.mrf.mxu1 }
 0x260   :  { %v1128_v44 = vadd.f32 %v1127_v21, %v1114_v4  ;;  %v1134_v63 = vmax.f32 %v1100_v29, 0.0 }
 0x262   :  { %v1135_v57 = vmax.f32 %v1128_v44, 0.0  ;;  %1152 = vst [vmem:[#allocation11 + $0x20] sm:$0xff] %v1134_v63  ;;  %v1156_v18 = vsub.f32 %v2907_v15, %v1134_v63 }
 0x264   :  { %1153 = vst [vmem:[#allocation11 + $0x28] sm:$0xff] %v1135_v57  ;;  %v1157_v5 = vsub.f32 %v2906_v28, %v1135_v57 }
 0x265   :  { %1160 = vst [vmem:[#allocation12 + $0x20] sm:$0xff] %v1156_v18  ;;  %v1101_v19 = vpop.f32.mrf.mxu2 }
 0x266   :  { %1161 = vst [vmem:[#allocation12 + $0x28] sm:$0xff] %v1157_v5  ;;  %v1102_v6 = vadd.f32 %v1101_v19, %v1088_v37 }
 0x267   :  { %v1129_v20 = vpop.f32.mrf.mxu1 }
 0x268   :  { %v1130_v13 = vadd.f32 %v1129_v20, %v1116_v55  ;;  %v1138_v41 = vmax.f32 %v1102_v6, 0.0 }
 0x26a   :  { %v1139_v62 = vmax.f32 %v1130_v13, 0.0  ;;  %1154 = vst [vmem:[#allocation11 + $0x30] sm:$0xff] %v1138_v41  ;;  %v1158_v42 = vsub.f32 %v2909_v38, %v1138_v41 }
 0x26c   :  { %1155 = vst [vmem:[#allocation11 + $0x38] sm:$0xff] %v1139_v62  ;;  %v1159_v11 = vsub.f32 %v2908_v50, %v1139_v62 }
 0x26d   :  { %1176 = dma.vmem_to_hbm [thread:$0]  %s1169_s13, 1024, %s1171_s2, [#allocation5], %s1537_s6, %s1537_s6, %s1526_s3   ;;  %1162 = vst [vmem:[#allocation12 + $0x30] sm:$0xff] %v1158_v42 }
 0x26e   :  { %1163 = vst [vmem:[#allocation12 + $0x38] sm:$0xff] %v1159_v11 }
 0x26f   :  { %1189 = dma.vmem_to_hbm [thread:$0]  %s1182_s17, 1024, %s1184_s1, [#allocation13], %s1537_s6, %s1537_s6, %s1526_s3  }
 0x270   :  { %1514 = dma.done.wait [#allocation5], 1024  }
 0x271   :  { %1515 = vsyncadd [#allocation5], 4294966272 }
 0x272   :  { %1516 = dma.done.wait [#allocation13], 1024  }
 0x273   :  { %1517 = vsyncadd [#allocation13], 4294966272 }
 0x274   :  { %1198 = vsyncpa [#allocation4], 1 }
 0x275   :  { %1199 = vsyncpa [#allocation7], 1 }
 0x276   :  { %1200 = vsyncpa [#allocation10], 1 }
 0x277   :  { %1201 = vsyncpa [#allocation5], 1 }
 0x278   :  { %1202 = vsyncpa [#allocation13], 1 }

</bundles_post_ra>
